<compile_context>
chip_gen: v7x
topology: tpu7x:2x2x1
jax: 0.10.0
libtpu: 0.0.40
codegen_flags: <defaults>
</compile_context>

<pallas_src>
import jax
import jax.numpy as jnp
from jax.experimental import pallas as pl
from jax.experimental.pallas import tpu as pltpu

SELU_ALPHA = 1.6732632423543772
SELU_SCALE = 1.0507009873554805


def _selu(x):
    # torch.nn.functional.selu semantics (kept in float32).
    return SELU_SCALE * jnp.where(x > 0, x, SELU_ALPHA * (jnp.exp(x) - 1.0))


def head_layer1_kernel(pooled_ref, w1_ref, b1_ref, h1_ref):
    # pooled_ref: [B, 2208]    f32, whole array (resident across the column grid)
    # w1_ref:     [2208, 256]  bf16 column tile of dens1 weight
    # b1_ref:     [1, 256]     f32 column tile of dens1 bias
    # h1_ref:     [B, 256]     f32 output tile (SELU already applied)
    x = pooled_ref[...].astype(jnp.bfloat16)          # cast only at the MXU input
    h = jnp.dot(x, w1_ref[...], preferred_element_type=jnp.float32) + b1_ref[...]
    # F.dropout(p=0.25, training=False) -> identity (inference)
    h1_ref[...] = _selu(h)


def head_layer23_kernel(h1_ref, w2_ref, b2_ref, w3_ref, b3_ref, out_ref):
    # h1_ref: [B, 512] f32 (SELU(dens1) output);  w2/w3 bf16;  b2/b3 f32.
    h = jnp.dot(h1_ref[...].astype(jnp.bfloat16), w2_ref[...],
                preferred_element_type=jnp.float32) + b2_ref[...]
    h = _selu(h)
    # F.dropout(p=0.25, training=False) -> identity (inference)
    out_ref[...] = (jnp.dot(h.astype(jnp.bfloat16), w3_ref[...],
                            preferred_element_type=jnp.float32) + b3_ref[...])


def my_densenet_forward(feat_nchw, params):
    """feat_nchw: [B, 2208, 7, 7] float32 (output of the densenet161 backbone).

    params = (w1_bf16, b1_f32, w2_bf16, b2_f32, w3_bf16, b3_f32)
    """
    w1, b1, w2, b2, w3, b3 = params
    B, C = feat_nchw.shape[0], feat_nchw.shape[1]
    H1 = w1.shape[1]          # 512
    H2 = w2.shape[1]          # 128
    nb_out = w3.shape[1]      # 28

    # F.relu + F.avg_pool2d(kernel_size=7).view(B, -1) on the 7x7 map:
    # mean over the trailing HxW of the NCHW tensor -> [B, C].  Done in plain JAX so
    # it fuses into the backbone; the kernel only sees the tiny pooled vector
    # (~8.8 KB / sample, so batch scaling never threatens v7x's smaller VMEM).
    pooled = jnp.mean(jnp.maximum(feat_nchw, 0.0), axis=(2, 3)).astype(jnp.float32)

    # ---- layer 1: Linear(2208 -> 512) + SELU, column-split over 2 tiles of 256 ----
    n_tiles = 2
    tile_n = H1 // n_tiles

    cost1 = pl.CostEstimate(
        flops=2 * B * C * H1,
        transcendentals=B * H1,
        bytes_accessed=int(pooled.size * 4 + w1.size * 2 + b1.size * 4 + B * H1 * 4),
    )

    h1 = pl.pallas_call(
        head_layer1_kernel,
        out_shape=jax.ShapeDtypeStruct((B, H1), jnp.float32),
        grid=(n_tiles,),
        in_specs=[
            pl.BlockSpec((B, C), lambda j: (0, 0)),        # pooled, resident
            pl.BlockSpec((C, tile_n), lambda j: (0, j)),   # w1 column tile (bf16)
            pl.BlockSpec((1, tile_n), lambda j: (0, j)),   # b1 column tile
        ],
        out_specs=pl.BlockSpec((B, tile_n), lambda j: (0, j)),
        compiler_params=pltpu.CompilerParams(
            dimension_semantics=("parallel",)),            # both v7x TCs share the w1 DMA
        cost_estimate=cost1,
    )(pooled, w1, b1)

    # ---- layers 2-3: Linear(512->128)+SELU, Linear(128->28) — tiny fused micro-call ----
    cost2 = pl.CostEstimate(
        flops=2 * B * (H1 * H2 + H2 * nb_out),
        transcendentals=B * H2,
        bytes_accessed=int(B * H1 * 4 + w2.size * 2 + b2.size * 4
                           + w3.size * 2 + b3.size * 4 + B * nb_out * 4),
    )

    out = pl.pallas_call(
        head_layer23_kernel,
        out_shape=jax.ShapeDtypeStruct((B, nb_out), jnp.float32),
        in_specs=[pl.BlockSpec(memory_space=pltpu.MemorySpace.VMEM)] * 5,
        out_specs=pl.BlockSpec(memory_space=pltpu.MemorySpace.VMEM),
        cost_estimate=cost2,
    )(h1, w2, b2, w3, b3)
    return out


def init_linear(key, fan_in, fan_out):
    """Deterministic init matching torch.nn.Linear's default U(-1/sqrt(fan_in), ...)."""
    kw, kb = jax.random.split(key)
    bound = 1.0 / (fan_in ** 0.5)
    w = jax.random.uniform(kw, (fan_in, fan_out), jnp.float32, -bound, bound)
    b = jax.random.uniform(kb, (1, fan_out), jnp.float32, -bound, bound)
    return w, b


def _reference(feat_nchw, params_f32):
    # Pure-JAX f32 reference matching the PyTorch forward semantics.
    w1, b1, w2, b2, w3, b3 = params_f32
    x = jnp.maximum(feat_nchw, 0.0)
    x = jnp.mean(x, axis=(2, 3))                     # avg_pool2d(7) + flatten
    x = _selu(x @ w1 + b1)
    x = _selu(x @ w2 + b2)
    return x @ w3 + b3


if __name__ == "__main__":
    key = jax.random.PRNGKey(0)
    k_feat, k1, k2, k3 = jax.random.split(key, 4)

    B, C, H, W = 2, 2208, 7, 7                       # densenet161 feature-map shape
    feat = jax.random.normal(k_feat, (B, C, H, W), jnp.float32)

    w1, b1 = init_linear(k1, 2208, 512)
    w2, b2 = init_linear(k2, 512, 128)
    w3, b3 = init_linear(k3, 128, 28)
    master_params = (w1, b1, w2, b2, w3, b3)

    # Weights streamed in bf16 (dominant w1 HBM traffic halved; native MXU path),
    # biases / accumulation / elementwise stay float32.
    params = (w1.astype(jnp.bfloat16), b1,
              w2.astype(jnp.bfloat16), b2,
              w3.astype(jnp.bfloat16), b3)

    out = my_densenet_forward(feat, params)
    out = jax.block_until_ready(out)

    assert out.shape == (B, 28), out.shape
    ref = _reference(feat, master_params)
    # bf16 weight/activation streaming with f32 accumulation: tolerance loosened
    # from 1e-4 to ~1e-2 (observed error is ~1e-3 abs).
    assert jnp.allclose(out, ref, atol=1e-2, rtol=1e-2), float(jnp.max(jnp.abs(out - ref)))

    print("KERNEL_OK")
</pallas_src>

<mosaic_0001>
module attributes {stable_mosaic.version = 11 : i64} {
  func.func @head_layer1_kernel(%arg0: i32, %arg1: memref<2x2208xf32, #tpu.memory_space<vmem>>, %arg2: memref<2208x256xbf16, #tpu.memory_space<vmem>>, %arg3: memref<1x256xf32, #tpu.memory_space<vmem>>, %arg4: memref<2x256xf32, #tpu.memory_space<vmem>>) attributes {dimension_semantics = [#tpu.dimension_semantics<parallel>], iteration_bounds = array<i64: 2>, scalar_prefetch = 0 : i64, scratch_operands = 0 : i64, tpu.core_type = #tpu.core_type<tc>, window_params = [{pipeline_mode = #tpu.pipeline_mode<synchronous>, transform_indices = @transform_0, window_bounds = array<i64: 2, 2208>}, {transform_indices = @transform_1, window_bounds = array<i64: 2208, 256>}, {transform_indices = @transform_2, window_bounds = array<i64: 1, 256>}, {transform_indices = @transform_3, window_bounds = array<i64: 2, 256>}]} {
    %c0 = arith.constant 0 : index
    %c0_0 = arith.constant 0 : index
    %0 = vector.load %arg1[%c0, %c0_0] : memref<2x2208xf32, #tpu.memory_space<vmem>>, vector<2x2208xf32>
    %1 = arith.truncf %0 : vector<2x2208xf32> to vector<2x2208xbf16>
    %c0_1 = arith.constant 0 : index
    %c0_2 = arith.constant 0 : index
    %2 = vector.load %arg2[%c0_1, %c0_2] : memref<2208x256xbf16, #tpu.memory_space<vmem>>, vector<2208x256xbf16>
    %cst = arith.constant dense<0.000000e+00> : vector<2x256xf32>
    %3 = tpu.matmul %1, %2, %cst {dimension_numbers = #tpu.dot_dimension_numbers<[1], [0], [0], [1], [0, 0, 1, 1], [], []>} : vector<2x2208xbf16>, vector<2208x256xbf16>, vector<2x256xf32> -> vector<2x256xf32>
    %c0_3 = arith.constant 0 : index
    %c0_4 = arith.constant 0 : index
    %4 = vector.load %arg3[%c0_3, %c0_4] : memref<1x256xf32, #tpu.memory_space<vmem>>, vector<1x256xf32>
    %5 = vector.broadcast %4 : vector<1x256xf32> to vector<2x256xf32>
    %6 = arith.addf %3, %5 : vector<2x256xf32>
    %cst_5 = arith.constant 0.000000e+00 : f32
    %7 = vector.broadcast %cst_5 : f32 to vector<2x256xf32>
    %8 = arith.cmpf ogt, %6, %7 : vector<2x256xf32>
    %9 = math.exp %6 : vector<2x256xf32>
    %cst_6 = arith.constant 1.000000e+00 : f32
    %10 = vector.broadcast %cst_6 : f32 to vector<2x256xf32>
    %11 = arith.subf %9, %10 : vector<2x256xf32>
    %cst_7 = arith.constant 1.67326319 : f32
    %12 = vector.broadcast %cst_7 : f32 to vector<2x256xf32>
    %13 = arith.mulf %12, %11 : vector<2x256xf32>
    %14 = arith.select %8, %6, %13 : vector<2x256xi1>, vector<2x256xf32>
    %cst_8 = arith.constant 1.05070102 : f32
    %15 = vector.broadcast %cst_8 : f32 to vector<2x256xf32>
    %16 = arith.mulf %15, %14 : vector<2x256xf32>
    %c0_9 = arith.constant 0 : index
    %c0_10 = arith.constant 0 : index
    %17 = vector.load %arg4[%c0_9, %c0_10] : memref<2x256xf32, #tpu.memory_space<vmem>>, vector<2x256xf32>
    tpu.vector_store %arg4[%c0_9, %c0_10], %16 {strides = array<i32>} : memref<2x256xf32, #tpu.memory_space<vmem>>, vector<2x256xf32>,
    return
  }
  func.func @transform_0(%arg0: i32) -> (i32, i32) {
    %c0_i32 = arith.constant 0 : i32
    %c0_i32_0 = arith.constant 0 : i32
    %c0_i32_1 = arith.constant 0 : i32
    return %c0_i32, %c0_i32_0 : i32, i32
  }
  func.func @transform_1(%arg0: i32) -> (i32, i32) {
    %c0_i32 = arith.constant 0 : i32
    %c0_i32_0 = arith.constant 0 : i32
    return %c0_i32, %arg0 : i32, i32
  }
  func.func @transform_2(%arg0: i32) -> (i32, i32) {
    %c0_i32 = arith.constant 0 : i32
    %c0_i32_0 = arith.constant 0 : i32
    return %c0_i32, %arg0 : i32, i32
  }
  func.func @transform_3(%arg0: i32) -> (i32, i32) {
    %c0_i32 = arith.constant 0 : i32
    %c0_i32_0 = arith.constant 0 : i32
    return %c0_i32, %arg0 : i32, i32
  }
}

</mosaic_0001>

<bundles_post_ra>
// kernel: tpu_custom_call.1
= control target key start
LH: loop header
LB: loop body
LE: loop exit
PB: predicated region body
PF: predicated region fallthrough
CT: control target
= control target key end

     0   :  { %8 = vsyncpa [#allocation3], 0  ;;  %s4139_s0 = inlined_call_operand.hbm [shape: f32[2,2208], index: 0, kind: input, shape index: {}]   ;;  %s4140_s1 = inlined_call_operand.hbm [shape: bf16[2208,512], index: 1, kind: input, shape index: {}]   ;;  %s4141_s2 = inlined_call_operand.hbm [shape: f32[1,512], index: 2, kind: input, shape index: {}]   ;;  %s4142_s3 = inlined_call_operand.hbm [shape: f32[2,512], index: 3, kind: output, shape index: {}]  }
   0x1   :  { %9 = vsyncpa [#allocation6], 0 }
   0x2   :  { %11 = vsyncpa [#allocation6 + $0x1], 0 }
   0x3   :  { %12 = vsyncpa [#allocation4], 0 }
   0x4   :  { %14 = vsyncpa [#allocation4 + $0x1], 0  ;;  %s3559_s12 = smov 0   ;;  %s3561_s13 = smov 0  }
   0x5   :  { %s3563_s14 = smov 0   ;;  %s3565_s15 = smov 0  }
   0x6 LB: > { %s3580_s16 = sadd.s32 1, %s3529_s15   ;;  %s48_s17 = sadd.s32 1, %s3525_s14  ;;  %s3529_s15 = sphi %s3565_s15, %s4169_s15   ;;  %s3525_s14 = sphi %s3563_s14, %s4168_s14   ;;  %s3521_s13 = sphi %s3561_s13, %s4167_s13   ;;  %s3517_s12 = sphi %s3559_s12, %s4166_s12  }
   0x7   : > { %s45_s18 = ssub.s32 %s3529_s15, %s3580_s16  ;;  %p55_p0 = scmp.ne.s32.totalorder %s3525_s14, %s3521_s13 }
   0x8   : > { %p46_p1 = scmp.eq.s32.totalorder %s45_s18, 0  ;;  %p56_p2 = scmp.eq.s32.totalorder %s3529_s15, 0 }
   0x9   : > { %p2909_p4 = scmp.lt.s32.totalorder %s3529_s15, 2  ;;  %s148_s20 = sand.u32 1, %s3529_s15  }
   0xa   : > { %s3591_s19 = scalar_select %p46_p1, %s3525_s14, %s48_s17  }
   0xb   : > { %p57_p5 = por %p56_p2, %p55_p0  ;;  %s150_s21 = sand.u32 1, %s3525_s14  }
   0xc   : > { %s2881_s22 = smul.u32 2208, %s150_s21  ;;  %s2846_s23 = sshll.u32 %s3529_s15, 7 }
   0xd   : > { %s3604_s26 = scalar_lea.hbm %s4140_s1, %s2846_s23  ;;  %p3606_p6 = pnand %p2909_p4, %p57_p5 }
   0xe   : > { %s152_s28 = scalar_lea.vmem [#allocation5], %s2881_s22  ;;  %s3612_s30 = scalar_lea.sflag [#allocation6], %s148_s20 }
   0xf   : > { %s4150_s27 = scalar_select %p3606_p6, 1, 0 }
  0x10   : > { %s159_s29 = sshll.u32 %s152_s28, 4  ;;  %s3371_s4 = scalar_lea.hbm %s3604_s26, 35328  ;;  %s3610_s29 = int_to_ptr.vmem [resolvable:$true] %s159_s29 }
  0x11   : > { %p3372_p7 = scmp.ne.s32.totalorder %s3604_s26, %s3371_s4  ;;  %p4144_p8 = pneg %p3606_p6 }
  0x12   : > { %s3376_s7 = scalar_lea.hbm %s4140_s1, 70656  ;;  %p3377_p11 = scmp.lt.u32.totalorder %s3604_s26, %s4140_s1 }
  0x13   : > { %p3374_p9 = pnand %p4144_p8, %p3372_p7  ;;  %p3378_p12 = scmp.lt.u32.totalorder %s3376_s7, %s3371_s4 }
  0x14   : > { %p3380_p1 = scmp.lt.u32.totalorder %s3371_s4, %s3604_s26 }
  0x15   : > { %p3375_p10 = pneg %p3374_p9  ;;  %p3379_p13 = por %p3378_p12, %p3377_p11 }
  0x17   : > { %p3381_p2 = por %p3380_p1, %p3379_p13 }
  0x19   : > { %p3382_p4 = pnand %p3381_p2, %p3375_p10 }
  0x1b   : > { %3385 = shalt.err (!%p3382_p4)
}
  0x1c   : > { %s3386_s10 = scalar_lea.vmem %s3610_s29, 35328  ;;  %s3531_s11 = smov [#allocation5]  }
  0x1d   : > { %p3387_p5 = scmp.ne.s32.totalorder %s3610_s29, %s3386_s10  ;;  %s3391_s17 = sshll.u32 %s3531_s11, 4  ;;  %s3392_s17 = int_to_ptr.vmem [resolvable:$false] %s3391_s17 }
  0x1e   : > { %s3393_s18 = scalar_lea.vmem %s3392_s17, 70656  ;;  %p3394_p3 = scmp.lt.s32.totalorder %s3610_s29, %s3392_s17 }
  0x1f   : > { %p3389_p7 = pnand %p3387_p5, %p4144_p8  ;;  %p3395_p11 = scmp.lt.s32.totalorder %s3393_s18, %s3386_s10 }
  0x21   : > { %p3390_p9 = pneg %p3389_p7  ;;  %p3396_p12 = por %p3395_p11, %p3394_p3 }
  0x23   : > { %p3397_p13 = pnand %p3396_p12, %p3390_p9 }
  0x25   : > { %3400 = shalt.err (!%p3397_p13)
}
  0x26   : > { %s3532_s20 = smov 256   ;;  %s3533_s22 = smov 128  }
  0x27   : > { %s3534_s23 = smov 8   ;;  %s3641_s24 = sadd.s32 4294967295, %s3529_s15  }
  0x28   : > { %2900 = dma.hbm_to_vmem [thread:$0]  (!%p3606_p6), %s3604_s26, 35328, %s3610_s29, %s3612_s30, %s3532_s20, %s3533_s22, %s3534_s23  }
  0x29   : > { %s2547_s25 = sadd.s32 4294967294, %s3529_s15   ;;  %p61_p3 = scmp.ne.s32.totalorder %s3521_s13, %s3517_s12 }
  0x2a   : > { %p4143_p10 = scmp.eq.s32.totalorder %s3641_s24, 0  ;;  %p111_p1 = scmp.eq.s32.totalorder %s3641_s24, 1 }
  0x2b   : > { %p117_p2 = scmp.eq.s32.totalorder %s2547_s25, 1  ;;  %p2548_p4 = scmp.ge.s32.totalorder %s3529_s15, 1 }
  0x2c   : > { %p3651_p5 = por %p4143_p10, %p61_p3  ;;  %p3658_p7 = por %p111_p1, %p55_p0 }
  0x2d   : > { %p3662_p9 = por %p117_p2, %p61_p3  ;;  %p124_p11 = scmp.lt.s32.totalorder %s3529_s15, 3 }
  0x2e   : > { %s4151_s28 = scalar_select %p3651_p5, 1, 0 }
  0x2f   : > { %s4152_s26 = scalar_select %p3658_p7, 1, 0 }
  0x30   : > { %s4153_s29 = scalar_select %p3662_p9, 1, 0 }
  0x31   : > { %p3667_p12 = pnand %p2548_p4, %p124_p11  ;;  %s3535_s5 = smov [#allocation2]  }
  0x32   : > { %s137_s6 = sshll.u32 %s3535_s5, 4  ;;  %s2553_s7 = sshll.u32 %s150_s21, 1  ;;  %s138_s6 = int_to_ptr.vmem [resolvable:$true] %s137_s6 }
  0x33   : > { %s4154_s4 = scalar_select %p3667_p12, 1, 0 }
  0x34   : > { %p2893_p13 = pneg %p3667_p12  ;;  %s2847_s8 = sshll.u32 %s3529_s15, 5 }
  0x35   : > { %s173_s9 = scalar_lea.vmem [#allocation7], %s2553_s7  ;;  %s3685_s20 = scalar_lea.hbm %s4141_s2, %s2847_s8 }
  0x36   : > { %s181_s10 = sshll.u32 %s173_s9, 4  ;;  %p3678_p0 = pnand %p2893_p13, %p4143_p10  ;;  %s3687_s10 = int_to_ptr.vmem [resolvable:$true] %s181_s10 }
  0x37   : > { %s3401_s23 = scalar_lea.hbm %s4139_s0, 576 }
  0x38   : > { %p3402_p3 = scmp.ne.s32.totalorder %s4139_s0, %s3401_s23  ;;  %p3403_p1 = pneg %p3678_p0 }
  0x39   : > { %p3408_p11 = scmp.lt.u32.totalorder %s3401_s23, %s4139_s0 }
  0x3a   : > { %p3404_p2 = pnand %p3403_p1, %p3402_p3 }
  0x3c   : > { %p3405_p4 = pneg %p3404_p2 }
  0x3e   : > { %p3410_p13 = pnand %p3408_p11, %p3405_p4 }
  0x40   : > { %3413 = shalt.err (!%p3410_p13)
}
  0x41   : > { %s3414_s8 = scalar_lea.vmem %s138_s6, 576  ;;  %p3422_p7 = scmp.lt.s32.totalorder %s138_s6, %s138_s6 }
  0x42   : > { %p3415_p10 = scmp.ne.s32.totalorder %s138_s6, %s3414_s8  ;;  %p3423_p5 = scmp.lt.s32.totalorder %s3414_s8, %s3414_s8 }
  0x44   : > { %p3417_p8 = pnand %p3415_p10, %p3403_p1  ;;  %p3424_p12 = por %p3423_p5, %p3422_p7 }
  0x46   : > { %p3418_p9 = pneg %p3417_p8 }
  0x48   : > { %p3425_p6 = pnand %p3424_p12, %p3418_p9 }
  0x4a   : > { %3428 = shalt.err (!%p3425_p6)
}
  0x4b   : > { %2896 = dma.hbm_to_vmem [thread:$0]  (!%p3678_p0), %s4139_s0, 576, %s138_s6, [#allocation3]  }
  0x4c   : > { %s3429_s21 = scalar_lea.hbm %s3685_s20, 32  ;;  %p4156_p10 = scmp.ne.s32.totalorder %s4150_s27, 0 }
  0x4d   : > { %p3430_p3 = scmp.ne.s32.totalorder %s3685_s20, %s3429_s21  ;;  %s3434_s25 = scalar_lea.hbm %s4141_s2, 64 }
  0x4e   : > { %p4157_p8 = pneg %p4156_p10  ;;  %p3435_p6 = scmp.lt.u32.totalorder %s3685_s20, %s4141_s2 }
  0x4f   : > { %p3436_p5 = scmp.lt.u32.totalorder %s3434_s25, %s3429_s21  ;;  %p3438_p9 = scmp.lt.u32.totalorder %s3429_s21, %s3685_s20 }
  0x50   : > { %p3432_p1 = pnand %p3430_p3, %p4157_p8 }
  0x51   : > { %p3437_p7 = por %p3436_p5, %p3435_p6 }
  0x52   : > { %p3433_p2 = pneg %p3432_p1 }
  0x53   : > { %p3439_p12 = por %p3438_p9, %p3437_p7 }
  0x55   : > { %p3440_p4 = pnand %p3439_p12, %p3433_p2 }
  0x57   : > { %3443 = shalt.err (!%p3440_p4)
}
  0x58   : > { %s3444_s6 = scalar_lea.vmem %s3687_s10, 32  ;;  %p4158_p11 = pmov %p4157_p8 }
  0x59   : > { %p3445_p0 = scmp.ne.s32.totalorder %s3687_s10, %s3444_s6  ;;  %s3536_s7 = smov [#allocation7]  }
  0x5a   : > { %s3449_s9 = sshll.u32 %s3536_s7, 4  ;;  %s3450_s9 = int_to_ptr.vmem [resolvable:$false] %s3449_s9 }
  0x5b   : > { %p3447_p13 = pnand %p3445_p0, %p4158_p11  ;;  %s3451_s8 = scalar_lea.vmem %s3450_s9, 64 }
  0x5c   : > { %p3452_p8 = scmp.lt.s32.totalorder %s3687_s10, %s3450_s9  ;;  %p3453_p1 = scmp.lt.s32.totalorder %s3451_s8, %s3444_s6 }
  0x5d   : > { %p3448_p3 = pneg %p3447_p13 }
  0x5e   : > { %p3454_p6 = por %p3453_p1, %p3452_p8 }
  0x60   : > { %p3455_p5 = pnand %p3454_p6, %p3448_p3 }
  0x62   : > { %3458 = shalt.err (!%p3455_p5)
}
  0x63   : > { %2903 = dma.hbm_to_vmem [thread:$0]  (!%p4156_p10), %s3685_s20, 32, %s3687_s10, %s3612_s30  }
  0x64   : > { %p4159_p2 = scmp.ne.s32.totalorder %s4154_s4, 0 }
  0x65   : > { %p4160_p7 = scmp.eq.s32.totalorder (!%p4159_p2), %s3641_s24, 0 }
  0x66   : > { %190 = sbr.rel (%p4159_p2) target bundleno = 664 (0x298), region = 32 }
  0x6d   : > { %3504 = dma.done.wait (%p4160_p7), [#allocation3], 576   ;;  %p4161_p9 = pmov %p4160_p7 }
  0x6e   : > { %s196_s17 = sand.u32 1, %s3641_s24   ;;  %s3737_s18 = sand.u32 1, %s3521_s13  }
  0x6f   : > { %3506 = vsyncadd (%p4161_p9), [#allocation3], 4294966720  ;;  %s2882_s27 = smul.u32 2208, %s3737_s18  ;;  %s197_s21 = scalar_lea.sflag [#allocation6], %s196_s17 }
  0x70   : > { %p4162_p10 = scmp.ne.s32.totalorder %s4151_s28, 0 }
  0x71   : > { %s3740_s22 = scalar_lea.vmem [#allocation5], %s2882_s27 }
  0x72   : > { %3508 = dma.done.wait (%p4162_p10), %s197_s21, 35360  }
  0x73   : > { %3510 = vsyncadd (%p4162_p10), %s197_s21, 4294931936  ;;  %v2949_v0 = vld [vmem:[%s3740_s22 + $0x4] ss:$8 sps:$4 sm:$0xff]   ;;  %v2953_v2 = vld [vmem:[%s3740_s22] ss:$8 sps:$4 sm:$0xff]   ;;  %v255_v38 = vlaneseq  ;;  %vm2031_vm0 = vcmask 261120  }
  0x74   : > { %v2951_v1 = vld [vmem:[%s3740_s22 + $0x404] ss:$8 sps:$4 sm:$0xff]   ;;  %2035 = vmatprep.subr.bf16.mxu1 %v2949_v0  ;;  %v2954_v3 = vld [vmem:[%s3740_s22 + $0x400] ss:$8 sps:$4 sm:$0xff]   ;;  %v2955_v4 = vld [vmem:[%s3740_s22 + $0x14] ss:$8 sps:$4 sm:$0xff]  }
  0x75   : > { %2199 = vmatprep.subr.bf16.mxu0 %v2951_v1  ;;  %2036 = vmatpush1.bf16.msra.mxu1 %v2953_v2  ;;  %v2957_v5 = vld [vmem:[%s3740_s22 + $0x414] ss:$8 sps:$4 sm:$0xff]   ;;  %v2959_v6 = vld [vmem:[%s3740_s22 + $0x10] ss:$8 sps:$4 sm:$0xff]   ;;  %v2961_v8 = vld [vmem:[%s3740_s22 + $0x24] ss:$8 sps:$4 sm:$0xff]  }
  0x76   : > { %2200 = vmatpush1.bf16.msra.mxu0 %v2954_v3  ;;  %2037 = vmatprep.subr.bf16.mxu1 %v2955_v4  ;;  %v2960_v7 = vld [vmem:[%s3740_s22 + $0x410] ss:$8 sps:$4 sm:$0xff]   ;;  %v2963_v9 = vld [vmem:[%s3740_s22 + $0x424] ss:$8 sps:$4 sm:$0xff]   ;;  %v2965_v10 = vld [vmem:[%s3740_s22 + $0x20] ss:$8 sps:$4 sm:$0xff]  }
  0x77   : > { %2201 = vmatprep.subr.bf16.mxu0 %v2957_v5  ;;  %v2966_v11 = vld [vmem:[%s3740_s22 + $0x420] ss:$8 sps:$4 sm:$0xff]   ;;  %v2967_v12 = vld [vmem:[%s3740_s22 + $0x34] ss:$8 sps:$4 sm:$0xff]   ;;  %v2971_v14 = vld [vmem:[%s3740_s22 + $0x30] ss:$8 sps:$4 sm:$0xff]  }
  0x78   : > { %v2969_v13 = vld [vmem:[%s3740_s22 + $0x434] ss:$8 sps:$4 sm:$0xff]   ;;  %v2972_v15 = vld [vmem:[%s3740_s22 + $0x430] ss:$8 sps:$4 sm:$0xff]   ;;  %v2973_v16 = vld [vmem:[%s3740_s22 + $0x44] ss:$8 sps:$4 sm:$0xff]  }
  0x79   : > { %2038 = vmatpush1.bf16.msra.mxu1 %v2959_v6  ;;  %v2975_v17 = vld [vmem:[%s3740_s22 + $0x444] ss:$8 sps:$4 sm:$0xff]   ;;  %v2977_v18 = vld [vmem:[%s3740_s22 + $0x40] ss:$8 sps:$4 sm:$0xff]   ;;  %v2979_v20 = vld [vmem:[%s3740_s22 + $0x54] ss:$8 sps:$4 sm:$0xff]  }
  0x7a   : > { %2202 = vmatpush1.bf16.msra.mxu0 %v2960_v7  ;;  %2039 = vmatprep.subr.bf16.mxu1 %v2961_v8  ;;  %v2978_v19 = vld [vmem:[%s3740_s22 + $0x440] ss:$8 sps:$4 sm:$0xff]   ;;  %v2981_v21 = vld [vmem:[%s3740_s22 + $0x454] ss:$8 sps:$4 sm:$0xff]   ;;  %v2983_v22 = vld [vmem:[%s3740_s22 + $0x50] ss:$8 sps:$4 sm:$0xff]  }
  0x7b   : > { %2203 = vmatprep.subr.bf16.mxu0 %v2963_v9  ;;  %v2984_v23 = vld [vmem:[%s3740_s22 + $0x450] ss:$8 sps:$4 sm:$0xff]   ;;  %v2985_v24 = vld [vmem:[%s3740_s22 + $0x64] ss:$8 sps:$4 sm:$0xff]   ;;  %v2989_v26 = vld [vmem:[%s3740_s22 + $0x60] ss:$8 sps:$4 sm:$0xff]  }
  0x7c   : > { %v2987_v25 = vld [vmem:[%s3740_s22 + $0x464] ss:$8 sps:$4 sm:$0xff]   ;;  %v2990_v27 = vld [vmem:[%s3740_s22 + $0x460] ss:$8 sps:$4 sm:$0xff]   ;;  %v2991_v28 = vld [vmem:[%s3740_s22 + $0x74] ss:$8 sps:$4 sm:$0xff]  }
  0x7d   : > { %2040 = vmatpush1.bf16.msra.mxu1 %v2965_v10  ;;  %v2993_v29 = vld [vmem:[%s3740_s22 + $0x474] ss:$8 sps:$4 sm:$0xff]   ;;  %v2995_v30 = vld [vmem:[%s3740_s22 + $0x70] ss:$8 sps:$4 sm:$0xff]   ;;  %v2997_v32 = vld [vmem:[%s3740_s22 + $0x84] ss:$8 sps:$4 sm:$0xff]  }
  0x7e   : > { %2204 = vmatpush1.bf16.msra.mxu0 %v2966_v11  ;;  %2041 = vmatprep.subr.bf16.mxu1 %v2967_v12  ;;  %v2996_v31 = vld [vmem:[%s3740_s22 + $0x470] ss:$8 sps:$4 sm:$0xff]   ;;  %v2999_v33 = vld [vmem:[%s3740_s22 + $0x484] ss:$8 sps:$4 sm:$0xff]   ;;  %v3001_v34 = vld [vmem:[%s3740_s22 + $0x80] ss:$8 sps:$4 sm:$0xff]  }
  0x7f   : > { %2205 = vmatprep.subr.bf16.mxu0 %v2969_v13  ;;  %v3002_v35 = vld [vmem:[%s3740_s22 + $0x480] ss:$8 sps:$4 sm:$0xff]   ;;  %v3537_v36 = vmov 1983009808   ;;  %v3003_v39 = vld [vmem:[%s3740_s22 + $0x94] ss:$8 sps:$4 sm:$0xff]  }
  0x80   : > { %v253_v37 = vunpack.c.l.s4 %v3537_v36  ;;  %v3005_v40 = vld [vmem:[%s3740_s22 + $0x494] ss:$8 sps:$4 sm:$0xff]   ;;  %v3007_v41 = vld [vmem:[%s3740_s22 + $0x90] ss:$8 sps:$4 sm:$0xff]   ;;  %v3785_v43 = vshrl.u32 %v255_v38, 7  ;;  %s2558_s30 = sshll.u32 %s3737_s18, 1 }
  0x81   : > { %2042 = vmatpush1.bf16.msra.mxu1 %v2971_v14  ;;  %v3008_v44 = vld [vmem:[%s3740_s22 + $0x490] ss:$8 sps:$4 sm:$0xff]   ;;  %v3009_v45 = vld [vmem:[%s3740_s22 + $0xa4] ss:$8 sps:$4 sm:$0xff]   ;;  %v3013_v47 = vld [vmem:[%s3740_s22 + $0xa0] ss:$8 sps:$4 sm:$0xff]  }
  0x82   : > { %2206 = vmatpush1.bf16.msra.mxu0 %v2972_v15  ;;  %2043 = vmatprep.subr.bf16.mxu1 %v2973_v16  ;;  %v254_v42 = vunpack.c.0.s8 %v253_v37  ;;  %v3011_v46 = vld [vmem:[%s3740_s22 + $0x4a4] ss:$8 sps:$4 sm:$0xff]   ;;  %v3014_v48 = vld [vmem:[%s3740_s22 + $0x4a0] ss:$8 sps:$4 sm:$0xff]   ;;  %v3015_v50 = vld [vmem:[%s3740_s22 + $0xb4] ss:$8 sps:$4 sm:$0xff]  }
  0x83   : > { %2207 = vmatprep.subr.bf16.mxu0 %v2975_v17  ;;  %v3017_v51 = vld [vmem:[%s3740_s22 + $0x4b4] ss:$8 sps:$4 sm:$0xff]   ;;  %v3019_v53 = vld [vmem:[%s3740_s22 + $0xb0] ss:$8 sps:$4 sm:$0xff]   ;;  %v3021_v57 = vld [vmem:[%s3740_s22 + $0xc4] ss:$8 sps:$4 sm:$0xff]  }
  0x84   : > { %v3793_v49 = vsub.s32 %v254_v42, %v3785_v43  ;;  %v241_v52 = vld [vmem:[#allocation2] sm:$0xff]  ;;  %v3020_v55 = vld [vmem:[%s3740_s22 + $0x4b0] ss:$8 sps:$4 sm:$0xff]   ;;  %v3023_v58 = vld [vmem:[%s3740_s22 + $0x4c4] ss:$8 sps:$4 sm:$0xff]   ;;  %s209_s28 = scalar_lea.vmem [#allocation7], %s2558_s30 }
  0x85   : > { %2044 = vmatpush1.bf16.msra.mxu1 %v2977_v18  ;;  %v243_v56 = vld [vmem:[#allocation2 + $0x10] sm:$0xff]  ;;  %v3025_v63 = vld [vmem:[%s3740_s22 + $0xc0] ss:$8 sps:$4 sm:$0xff]   ;;  %v3027_v1 = vld [vmem:[%s3740_s22 + $0xd4] ss:$8 sps:$4 sm:$0xff]   ;;  %v251_v8 = vcombine.high %v241_v52, %v241_v52  ;;  %s2559_s4 = sshll.u32 %s3737_s18, 2 }
  0x86   : > { %2208 = vmatpush1.bf16.msra.mxu0 %v2978_v19  ;;  %2045 = vmatprep.subr.bf16.mxu1 %v2979_v20  ;;  %v3799_v54 = vrot.slane %v241_v52, %v3793_v49  ;;  %v292_v60 = vrot.slane %v243_v56, %v3793_v49  ;;  %v3026_v0 = vld [vmem:[%s3740_s22 + $0x4c0] ss:$8 sps:$4 sm:$0xff]   ;;  %v3029_v2 = vld [vmem:[%s3740_s22 + $0x4d4] ss:$8 sps:$4 sm:$0xff]   ;;  %v3031_v4 = vld [vmem:[%s3740_s22 + $0xd0] ss:$8 sps:$4 sm:$0xff]   ;;  %v285_v9 = vcombine.high %v243_v56, %v243_v56 }
  0x87   : > { %2209 = vmatprep.subr.bf16.mxu0 %v2981_v21  ;;  %v3032_v5 = vld [vmem:[%s3740_s22 + $0x4d0] ss:$8 sps:$4 sm:$0xff]   ;;  %v3033_v6 = vld [vmem:[%s3740_s22 + $0xe4] ss:$8 sps:$4 sm:$0xff]   ;;  %v3037_v10 = vld [vmem:[%s3740_s22 + $0xe0] ss:$8 sps:$4 sm:$0xff]   ;;  %v3820_v14 = vrot.slane %v251_v8, %v3793_v49 }
  0x88   : > { %v266_v59 = vcombine.high %v3799_v54, %v3799_v54  ;;  %v300_v62 = vcombine.high %v292_v60, %v292_v60  ;;  %v3035_v7 = vld [vmem:[%s3740_s22 + $0x4e4] ss:$8 sps:$4 sm:$0xff]   ;;  %v3038_v11 = vld [vmem:[%s3740_s22 + $0x4e0] ss:$8 sps:$4 sm:$0xff]   ;;  %v3039_v12 = vld [vmem:[%s3740_s22 + $0xf4] ss:$8 sps:$4 sm:$0xff]   ;;  %v3823_v15 = vrot.slane %v285_v9, %v3793_v49 }
  0x89   : > { %2046 = vmatpush1.bf16.msra.mxu1 %v2983_v22  ;;  %v3041_v13 = vld [vmem:[%s3740_s22 + $0x4f4] ss:$8 sps:$4 sm:$0xff]   ;;  %v3043_v16 = vld [vmem:[%s3740_s22 + $0xf0] ss:$8 sps:$4 sm:$0xff]   ;;  %v3048_v18 = vld [vmem:[%s3740_s22 + $0x104] ss:$8 sps:$4 sm:$0xff]   ;;  %v267_v20 = vcombine.high %v3820_v14, %v3820_v14  ;;  %v345_v22 = vpack.c.bf16 %v3799_v54, %v3799_v54 }
  0x8a   : > { %2210 = vmatpush1.bf16.msra.mxu0 %v2984_v23  ;;  %2047 = vmatprep.subr.bf16.mxu1 %v2985_v24  ;;  %v346_v61 = vpack.c.bf16 %v266_v59, %v266_v59  ;;  %v354_v3 = vpack.c.bf16 %v300_v62, %v300_v62  ;;  %v3044_v17 = vld [vmem:[%s3740_s22 + $0x4f0] ss:$8 sps:$4 sm:$0xff]   ;;  %v3052_v19 = vld [vmem:[%s3740_s22 + $0x504] ss:$8 sps:$4 sm:$0xff]   ;;  %v301_v21 = vcombine.high %v3823_v15, %v3823_v15  ;;  %v3046_v24 = vld [vmem:[%s3740_s22 + $0x100] ss:$8 sps:$4 sm:$0xff]  }
  0x8b   : > { %2211 = vmatprep.subr.bf16.mxu0 %v2987_v25  ;;  %v353_v23 = vpack.c.bf16 %v292_v60, %v292_v60  ;;  %v3050_v25 = vld [vmem:[%s3740_s22 + $0x500] ss:$8 sps:$4 sm:$0xff]   ;;  %v3067_v36 = vld [vmem:[%s3740_s22 + $0x134] ss:$8 sps:$4 sm:$0xff]   ;;  %v3065_v38 = vld [vmem:[%s3740_s22 + $0x130] ss:$8 sps:$4 sm:$0xff]  }
  0x8c   : > { %2067 = vmatprep.mubr.bf16.mxu1 %v346_v61  ;;  %2231 = vmatprep.mubr.bf16.mxu0 %v354_v3  ;;  %v3070_v37 = vld [vmem:[%s3740_s22 + $0x534] ss:$8 sps:$4 sm:$0xff]   ;;  %v3071_v42 = vld [vmem:[%s3740_s22 + $0x140] ss:$8 sps:$4 sm:$0xff]   ;;  %v3089_v56 = vld [vmem:[%s3740_s22 + $0x170] ss:$8 sps:$4 sm:$0xff]  }
  0x8d   : > { %2048 = vmatpush1.bf16.msra.mxu1 %v2989_v26  ;;  %v3055_v26 = vld [vmem:[%s3740_s22 + $0x114] ss:$8 sps:$4 sm:$0xff]   ;;  %v3083_v52 = vld [vmem:[%s3740_s22 + $0x160] ss:$8 sps:$4 sm:$0xff]   ;;  %v3100_v59 = vld [vmem:[%s3740_s22 + $0x584] ss:$8 sps:$4 sm:$0xff]  }
  0x8e   : > { %2212 = vmatpush1.bf16.msra.mxu0 %v2990_v27  ;;  %2049 = vmatprep.subr.bf16.mxu1 %v2991_v28  ;;  %v3058_v27 = vld [vmem:[%s3740_s22 + $0x514] ss:$8 sps:$4 sm:$0xff]   ;;  %v348_v28 = vpack.c.bf16 %v267_v20, %v267_v20  ;;  %v3095_v60 = vld [vmem:[%s3740_s22 + $0x180] ss:$8 sps:$4 sm:$0xff]   ;;  %v3112_v3 = vld [vmem:[%s3740_s22 + $0x5a4] ss:$8 sps:$4 sm:$0xff]  }
  0x8f   : > { %2213 = vmatprep.subr.bf16.mxu0 %v2993_v29  ;;  %v356_v29 = vpack.c.bf16 %v301_v21, %v301_v21  ;;  %v3091_v54 = vld [vmem:[%s3740_s22 + $0x174] ss:$8 sps:$4 sm:$0xff]   ;;  %v3098_v61 = vld [vmem:[%s3740_s22 + $0x580] ss:$8 sps:$4 sm:$0xff]   ;;  %v3113_v8 = vld [vmem:[%s3740_s22 + $0x1b0] ss:$8 sps:$4 sm:$0xff]  }
  0x90   : > { %v3103_v62 = vld [vmem:[%s3740_s22 + $0x194] ss:$8 sps:$4 sm:$0xff]   ;;  %v3116_v9 = vld [vmem:[%s3740_s22 + $0x5b0] ss:$8 sps:$4 sm:$0xff]   ;;  %v3133_v20 = vld [vmem:[%s3740_s22 + $0x1e4] ss:$8 sps:$4 sm:$0xff]  }
  0x91   : > { %2050 = vmatpush1.bf16.msra.mxu1 %v2995_v30  ;;  %v3053_v30 = vld [vmem:[%s3740_s22 + $0x110] ss:$8 sps:$4 sm:$0xff]   ;;  %v3136_v21 = vld [vmem:[%s3740_s22 + $0x5e4] ss:$8 sps:$4 sm:$0xff]   ;;  %s2848_s10 = sshll.u32 %s3641_s24, 6  ;;  %s236_s20 = scalar_lea.vmem [#allocation8], %s2559_s4 }
  0x92   : > { %2214 = vmatpush1.bf16.msra.mxu0 %v2996_v31  ;;  %2051 = vmatprep.subr.bf16.mxu1 %v2997_v32  ;;  %v3056_v31 = vld [vmem:[%s3740_s22 + $0x510] ss:$8 sps:$4 sm:$0xff]   ;;  %v3061_v32 = vld [vmem:[%s3740_s22 + $0x124] ss:$8 sps:$4 sm:$0xff]   ;;  %s2445_s23 = sshll.u32 %s236_s20, 4  ;;  %s4095_s5 = scalar_lea.hbm %s4142_s3, %s2848_s10  ;;  %s4097_s23 = int_to_ptr.vmem [resolvable:$true] %s2445_s23 }
  0x93   : > { %2215 = vmatprep.subr.bf16.mxu0 %v2999_v33  ;;  %v3064_v33 = vld [vmem:[%s3740_s22 + $0x524] ss:$8 sps:$4 sm:$0xff]   ;;  %s2431_s6 = scalar_lea.sflag [#allocation4], %s3737_s18  ;;  %s3459_s7 = scalar_lea.vmem %s4097_s23, 64 }
  0x94   : > { %p3460_p12 = scmp.ne.s32.totalorder %s4097_s23, %s3459_s7  ;;  %p4163_p4 = scmp.ne.s32.totalorder %s4152_s26, 0 }
  0x95   : > { %2052 = vmatpush1.bf16.msra.mxu1 %v3001_v34  ;;  %v3059_v34 = vld [vmem:[%s3740_s22 + $0x120] ss:$8 sps:$4 sm:$0xff]   ;;  %s3538_s24 = smov [#allocation8]  }
  0x96   : > { %2216 = vmatpush1.bf16.msra.mxu0 %v3002_v35  ;;  %2053 = vmatprep.subr.bf16.mxu1 %v3003_v39  ;;  %v3062_v35 = vld [vmem:[%s3740_s22 + $0x520] ss:$8 sps:$4 sm:$0xff]   ;;  %v3068_v39 = vld [vmem:[%s3740_s22 + $0x530] ss:$8 sps:$4 sm:$0xff]   ;;  %p3461_p0 = pnand %p3460_p12, %p4163_p4  ;;  %s3463_s9 = sshll.u32 %s3538_s24, 4  ;;  %s3464_s9 = int_to_ptr.vmem [resolvable:$false] %s3463_s9 }
  0x97   : > { %2217 = vmatprep.subr.bf16.mxu0 %v3005_v40  ;;  %v3073_v40 = vld [vmem:[%s3740_s22 + $0x144] ss:$8 sps:$4 sm:$0xff]   ;;  %s3465_s8 = scalar_lea.vmem %s3464_s9, 128  ;;  %p3466_p13 = scmp.lt.s32.totalorder %s4097_s23, %s3464_s9 }
  0x98   : > { %p3462_p11 = pneg %p3461_p0  ;;  %p3467_p3 = scmp.lt.s32.totalorder %s3465_s8, %s3459_s7 }
  0x99   : > { %2054 = vmatpush1.bf16.msra.mxu1 %v3007_v41  ;;  %v3076_v41 = vld [vmem:[%s3740_s22 + $0x544] ss:$8 sps:$4 sm:$0xff]  }
  0x9a   : > { %2218 = vmatpush1.bf16.msra.mxu0 %v3008_v44  ;;  %2055 = vmatprep.subr.bf16.mxu1 %v3009_v45  ;;  %v3074_v44 = vld [vmem:[%s3740_s22 + $0x540] ss:$8 sps:$4 sm:$0xff]   ;;  %v3079_v45 = vld [vmem:[%s3740_s22 + $0x154] ss:$8 sps:$4 sm:$0xff]   ;;  %p3468_p8 = por %p3467_p3, %p3466_p13 }
  0x9b   : > { %2219 = vmatprep.subr.bf16.mxu0 %v3011_v46  ;;  %v3082_v46 = vld [vmem:[%s3740_s22 + $0x554] ss:$8 sps:$4 sm:$0xff]  }
  0x9c   : > { %p3469_p1 = pnand %p3468_p8, %p3462_p11 }
  0x9d   : > { %2056 = vmatpush1.bf16.msra.mxu1 %v3013_v47  ;;  %v3077_v47 = vld [vmem:[%s3740_s22 + $0x150] ss:$8 sps:$4 sm:$0xff]  }
  0x9e   : > { %2220 = vmatpush1.bf16.msra.mxu0 %v3014_v48  ;;  %2057 = vmatprep.subr.bf16.mxu1 %v3015_v50  ;;  %v3080_v48 = vld [vmem:[%s3740_s22 + $0x550] ss:$8 sps:$4 sm:$0xff]   ;;  %v3085_v50 = vld [vmem:[%s3740_s22 + $0x164] ss:$8 sps:$4 sm:$0xff]  }
  0x9f   : > { %2221 = vmatprep.subr.bf16.mxu0 %v3017_v51  ;;  %v3088_v51 = vld [vmem:[%s3740_s22 + $0x564] ss:$8 sps:$4 sm:$0xff]  }
  0xa1   : > { %2058 = vmatpush1.bf16.msra.mxu1 %v3019_v53  ;;  %v3086_v53 = vld [vmem:[%s3740_s22 + $0x560] ss:$8 sps:$4 sm:$0xff]  }
  0xa2   : > { %2222 = vmatpush1.bf16.msra.mxu0 %v3020_v55  ;;  %2059 = vmatprep.subr.bf16.mxu1 %v3021_v57  ;;  %v3094_v55 = vld [vmem:[%s3740_s22 + $0x574] ss:$8 sps:$4 sm:$0xff]   ;;  %v3092_v57 = vld [vmem:[%s3740_s22 + $0x570] ss:$8 sps:$4 sm:$0xff]  }
  0xa3   : > { %2223 = vmatprep.subr.bf16.mxu0 %v3023_v58  ;;  %v3097_v58 = vld [vmem:[%s3740_s22 + $0x184] ss:$8 sps:$4 sm:$0xff]  }
  0xa5   : > { %2060 = vmatpush1.bf16.msra.mxu1 %v3025_v63  ;;  %v3106_v63 = vld [vmem:[%s3740_s22 + $0x594] ss:$8 sps:$4 sm:$0xff]  }
  0xa6   : > { %2224 = vmatpush1.bf16.msra.mxu0 %v3026_v0  ;;  %2061 = vmatprep.subr.bf16.mxu1 %v3027_v1  ;;  %v3101_v0 = vld [vmem:[%s3740_s22 + $0x190] ss:$8 sps:$4 sm:$0xff]  }
  0xa7   : > { %2225 = vmatprep.subr.bf16.mxu0 %v3029_v2  ;;  %v3104_v1 = vld [vmem:[%s3740_s22 + $0x590] ss:$8 sps:$4 sm:$0xff]   ;;  %v3109_v2 = vld [vmem:[%s3740_s22 + $0x1a4] ss:$8 sps:$4 sm:$0xff]  }
  0xa9   : > { %2062 = vmatpush1.bf16.msra.mxu1 %v3031_v4  ;;  %v3107_v4 = vld [vmem:[%s3740_s22 + $0x1a0] ss:$8 sps:$4 sm:$0xff]  }
  0xaa   : > { %2226 = vmatpush1.bf16.msra.mxu0 %v3032_v5  ;;  %2063 = vmatprep.subr.bf16.mxu1 %v3033_v6  ;;  %v3110_v5 = vld [vmem:[%s3740_s22 + $0x5a0] ss:$8 sps:$4 sm:$0xff]   ;;  %v3115_v6 = vld [vmem:[%s3740_s22 + $0x1b4] ss:$8 sps:$4 sm:$0xff]  }
  0xab   : > { %2227 = vmatprep.subr.bf16.mxu0 %v3035_v7  ;;  %v3118_v7 = vld [vmem:[%s3740_s22 + $0x5b4] ss:$8 sps:$4 sm:$0xff]  }
  0xad   : > { %2064 = vmatpush1.bf16.msra.mxu1 %v3037_v10  ;;  %v3121_v10 = vld [vmem:[%s3740_s22 + $0x1c4] ss:$8 sps:$4 sm:$0xff]  }
  0xae   : > { %2228 = vmatpush1.bf16.msra.mxu0 %v3038_v11  ;;  %2065 = vmatprep.subr.bf16.mxu1 %v3039_v12  ;;  %v3124_v11 = vld [vmem:[%s3740_s22 + $0x5c4] ss:$8 sps:$4 sm:$0xff]   ;;  %v3119_v12 = vld [vmem:[%s3740_s22 + $0x1c0] ss:$8 sps:$4 sm:$0xff]  }
  0xaf   : > { %2229 = vmatprep.subr.bf16.mxu0 %v3041_v13  ;;  %v3122_v13 = vld [vmem:[%s3740_s22 + $0x5c0] ss:$8 sps:$4 sm:$0xff]  }
  0xb1   : > { %2066 = vmatpush1.bf16.msra.mxu1 %v3043_v16  ;;  %v3127_v16 = vld [vmem:[%s3740_s22 + $0x1d4] ss:$8 sps:$4 sm:$0xff]  }
  0xb2   : > { %2230 = vmatpush1.bf16.msra.mxu0 %v3044_v17  ;;  %2076 = vmatprep.subr.bf16.mxu1 %v3048_v18  ;;  %v3130_v17 = vld [vmem:[%s3740_s22 + $0x5d4] ss:$8 sps:$4 sm:$0xff]   ;;  %v3125_v18 = vld [vmem:[%s3740_s22 + $0x1d0] ss:$8 sps:$4 sm:$0xff]  }
  0xb3   : > { %2240 = vmatprep.subr.bf16.mxu0 %v3052_v19  ;;  %v3128_v19 = vld [vmem:[%s3740_s22 + $0x5d0] ss:$8 sps:$4 sm:$0xff]  }
  0xb4   : > { %2068 = vmatmul.mubr.bf16.vlgmr.msra.gmra.mrb[0].mxu1 %v345_v22  ;;  %v3131_v22 = vld [vmem:[%s3740_s22 + $0x1e0] ss:$8 sps:$4 sm:$0xff]  }
  0xb5   : > { %2232 = vmatmul.mubr.bf16.vlgmr.msra.gmra.mrb[0].mxu0 %v353_v23  ;;  %2077 = vmatpush1.bf16.msra.mxu1 %v3046_v24  ;;  %v3134_v23 = vld [vmem:[%s3740_s22 + $0x5e0] ss:$8 sps:$4 sm:$0xff]   ;;  %v3139_v24 = vld [vmem:[%s3740_s22 + $0x1f4] ss:$8 sps:$4 sm:$0xff]  }
  0xb6   : > { %2241 = vmatpush1.bf16.msra.mxu0 %v3050_v25  ;;  %2078 = vmatprep.subr.bf16.mxu1 %v3055_v26  ;;  %v3142_v25 = vld [vmem:[%s3740_s22 + $0x5f4] ss:$8 sps:$4 sm:$0xff]   ;;  %v3137_v26 = vld [vmem:[%s3740_s22 + $0x1f0] ss:$8 sps:$4 sm:$0xff]  }
  0xb7   : > { %2242 = vmatprep.subr.bf16.mxu0 %v3058_v27  ;;  %2108 = vmatprep.mubr.bf16.mxu1 %v348_v28  ;;  %v3140_v27 = vld [vmem:[%s3740_s22 + $0x5f0] ss:$8 sps:$4 sm:$0xff]   ;;  %v3145_v28 = vld [vmem:[%s3740_s22 + $0x204] ss:$8 sps:$4 sm:$0xff]  }
  0xb8   : > { %2272 = vmatprep.mubr.bf16.mxu0 %v356_v29  ;;  %v3148_v29 = vld [vmem:[%s3740_s22 + $0x604] ss:$8 sps:$4 sm:$0xff]  }
  0xb9   : > { %2079 = vmatpush1.bf16.msra.mxu1 %v3053_v30  ;;  %v3143_v30 = vld [vmem:[%s3740_s22 + $0x200] ss:$8 sps:$4 sm:$0xff]  }
  0xba   : > { %2243 = vmatpush1.bf16.msra.mxu0 %v3056_v31  ;;  %2080 = vmatprep.subr.bf16.mxu1 %v3061_v32  ;;  %v347_v31 = vpack.c.bf16 %v3820_v14, %v3820_v14  ;;  %v355_v32 = vpack.c.bf16 %v3823_v15, %v3823_v15  ;;  %v3913_v14 = vld [vmem:[#allocation2 + $0x18] sm:$0xff] }
  0xbb   : > { %2244 = vmatprep.subr.bf16.mxu0 %v3064_v33  ;;  %v3146_v33 = vld [vmem:[%s3740_s22 + $0x600] ss:$8 sps:$4 sm:$0xff]   ;;  %v3149_v15 = vld [vmem:[%s3740_s22 + $0x210] ss:$8 sps:$4 sm:$0xff]  }
  0xbd   : > { %2081 = vmatpush1.bf16.msra.mxu1 %v3059_v34  ;;  %v3151_v34 = vld [vmem:[%s3740_s22 + $0x214] ss:$8 sps:$4 sm:$0xff]  }
  0xbe   : > { %2245 = vmatpush1.bf16.msra.mxu0 %v3062_v35  ;;  %2082 = vmatprep.subr.bf16.mxu1 %v3067_v36  ;;  %v3906_v35 = vld [vmem:[#allocation2 + $0x8] sm:$0xff]  ;;  %v3154_v36 = vld [vmem:[%s3740_s22 + $0x614] ss:$8 sps:$4 sm:$0xff]  }
  0xbf   : > { %2246 = vmatprep.subr.bf16.mxu0 %v3070_v37  ;;  %v3911_v37 = vrot.slane %v3906_v35, %v3793_v49 }
  0xc1   : > { %2083 = vmatpush1.bf16.msra.mxu1 %v3065_v38  ;;  %v3152_v38 = vld [vmem:[%s3740_s22 + $0x610] ss:$8 sps:$4 sm:$0xff]  }
  0xc2   : > { %2247 = vmatpush1.bf16.msra.mxu0 %v3068_v39  ;;  %2084 = vmatprep.subr.bf16.mxu1 %v3073_v40  ;;  %v283_v39 = vcombine.high %v3911_v37, %v3911_v37  ;;  %v3921_v40 = vrot.slane %v3913_v14, %v3793_v49 }
  0xc3   : > { %2248 = vmatprep.subr.bf16.mxu0 %v3076_v41  ;;  %v3157_v41 = vld [vmem:[%s3740_s22 + $0x224] ss:$8 sps:$4 sm:$0xff]  }
  0xc5   : > { %2085 = vmatpush1.bf16.msra.mxu1 %v3071_v42  ;;  %v3160_v42 = vld [vmem:[%s3740_s22 + $0x624] ss:$8 sps:$4 sm:$0xff]  }
  0xc6   : > { %2249 = vmatpush1.bf16.msra.mxu0 %v3074_v44  ;;  %2086 = vmatprep.subr.bf16.mxu1 %v3079_v45  ;;  %v350_v44 = vpack.c.bf16 %v283_v39, %v283_v39  ;;  %v317_v45 = vcombine.high %v3921_v40, %v3921_v40  ;;  %v3235_v39 = vld [vmem:[%s3740_s22 + $0x2f4] ss:$8 sps:$4 sm:$0xff]  }
  0xc7   : > { %2250 = vmatprep.subr.bf16.mxu0 %v3082_v46  ;;  %v3155_v46 = vld [vmem:[%s3740_s22 + $0x220] ss:$8 sps:$4 sm:$0xff]  }
  0xc9   : > { %2087 = vmatpush1.bf16.msra.mxu1 %v3077_v47  ;;  %v3158_v47 = vld [vmem:[%s3740_s22 + $0x620] ss:$8 sps:$4 sm:$0xff]  }
  0xca   : > { %2251 = vmatpush1.bf16.msra.mxu0 %v3080_v48  ;;  %2088 = vmatprep.subr.bf16.mxu1 %v3085_v50  ;;  %v358_v48 = vpack.c.bf16 %v317_v45, %v317_v45  ;;  %v3163_v50 = vld [vmem:[%s3740_s22 + $0x234] ss:$8 sps:$4 sm:$0xff]   ;;  %v3241_v45 = vld [vmem:[%s3740_s22 + $0x304] ss:$8 sps:$4 sm:$0xff]  }
  0xcb   : > { %2252 = vmatprep.subr.bf16.mxu0 %v3088_v51  ;;  %v3166_v51 = vld [vmem:[%s3740_s22 + $0x634] ss:$8 sps:$4 sm:$0xff]  }
  0xcd   : > { %2089 = vmatpush1.bf16.msra.mxu1 %v3083_v52  ;;  %v3161_v52 = vld [vmem:[%s3740_s22 + $0x230] ss:$8 sps:$4 sm:$0xff]  }
  0xce   : > { %2253 = vmatpush1.bf16.msra.mxu0 %v3086_v53  ;;  %2090 = vmatprep.subr.bf16.mxu1 %v3091_v54  ;;  %v3164_v53 = vld [vmem:[%s3740_s22 + $0x630] ss:$8 sps:$4 sm:$0xff]   ;;  %v3169_v54 = vld [vmem:[%s3740_s22 + $0x244] ss:$8 sps:$4 sm:$0xff]  }
  0xcf   : > { %2254 = vmatprep.subr.bf16.mxu0 %v3094_v55  ;;  %v3172_v55 = vld [vmem:[%s3740_s22 + $0x644] ss:$8 sps:$4 sm:$0xff]  }
  0xd1   : > { %2091 = vmatpush1.bf16.msra.mxu1 %v3089_v56  ;;  %v3167_v56 = vld [vmem:[%s3740_s22 + $0x240] ss:$8 sps:$4 sm:$0xff]  }
  0xd2   : > { %2255 = vmatpush1.bf16.msra.mxu0 %v3092_v57  ;;  %2092 = vmatprep.subr.bf16.mxu1 %v3097_v58  ;;  %v3170_v57 = vld [vmem:[%s3740_s22 + $0x640] ss:$8 sps:$4 sm:$0xff]   ;;  %v3175_v58 = vld [vmem:[%s3740_s22 + $0x254] ss:$8 sps:$4 sm:$0xff]  }
  0xd3   : > { %2256 = vmatprep.subr.bf16.mxu0 %v3100_v59  ;;  %v3178_v59 = vld [vmem:[%s3740_s22 + $0x654] ss:$8 sps:$4 sm:$0xff]  }
  0xd5   : > { %2093 = vmatpush1.bf16.msra.mxu1 %v3095_v60  ;;  %v3173_v60 = vld [vmem:[%s3740_s22 + $0x250] ss:$8 sps:$4 sm:$0xff]  }
  0xd6   : > { %2257 = vmatpush1.bf16.msra.mxu0 %v3098_v61  ;;  %2094 = vmatprep.subr.bf16.mxu1 %v3103_v62  ;;  %v3176_v61 = vld [vmem:[%s3740_s22 + $0x650] ss:$8 sps:$4 sm:$0xff]   ;;  %v3181_v62 = vld [vmem:[%s3740_s22 + $0x264] ss:$8 sps:$4 sm:$0xff]  }
  0xd7   : > { %2258 = vmatprep.subr.bf16.mxu0 %v3106_v63  ;;  %v3184_v63 = vld [vmem:[%s3740_s22 + $0x664] ss:$8 sps:$4 sm:$0xff]  }
  0xd9   : > { %2095 = vmatpush1.bf16.msra.mxu1 %v3101_v0  ;;  %v3179_v0 = vld [vmem:[%s3740_s22 + $0x260] ss:$8 sps:$4 sm:$0xff]  }
  0xda   : > { %2259 = vmatpush1.bf16.msra.mxu0 %v3104_v1  ;;  %2096 = vmatprep.subr.bf16.mxu1 %v3109_v2  ;;  %v3182_v1 = vld [vmem:[%s3740_s22 + $0x660] ss:$8 sps:$4 sm:$0xff]   ;;  %v3187_v2 = vld [vmem:[%s3740_s22 + $0x274] ss:$8 sps:$4 sm:$0xff]  }
  0xdb   : > { %2260 = vmatprep.subr.bf16.mxu0 %v3112_v3  ;;  %v3190_v3 = vld [vmem:[%s3740_s22 + $0x674] ss:$8 sps:$4 sm:$0xff]  }
  0xdd   : > { %2097 = vmatpush1.bf16.msra.mxu1 %v3107_v4  ;;  %v3185_v4 = vld [vmem:[%s3740_s22 + $0x270] ss:$8 sps:$4 sm:$0xff]  }
  0xde   : > { %2261 = vmatpush1.bf16.msra.mxu0 %v3110_v5  ;;  %2098 = vmatprep.subr.bf16.mxu1 %v3115_v6  ;;  %v3188_v5 = vld [vmem:[%s3740_s22 + $0x670] ss:$8 sps:$4 sm:$0xff]   ;;  %v3193_v6 = vld [vmem:[%s3740_s22 + $0x284] ss:$8 sps:$4 sm:$0xff]  }
  0xdf   : > { %2262 = vmatprep.subr.bf16.mxu0 %v3118_v7  ;;  %v3196_v7 = vld [vmem:[%s3740_s22 + $0x684] ss:$8 sps:$4 sm:$0xff]  }
  0xe1   : > { %2099 = vmatpush1.bf16.msra.mxu1 %v3113_v8  ;;  %v3191_v8 = vld [vmem:[%s3740_s22 + $0x280] ss:$8 sps:$4 sm:$0xff]  }
  0xe2   : > { %2263 = vmatpush1.bf16.msra.mxu0 %v3116_v9  ;;  %2100 = vmatprep.subr.bf16.mxu1 %v3121_v10  ;;  %v3194_v9 = vld [vmem:[%s3740_s22 + $0x680] ss:$8 sps:$4 sm:$0xff]   ;;  %v3199_v10 = vld [vmem:[%s3740_s22 + $0x294] ss:$8 sps:$4 sm:$0xff]  }
  0xe3   : > { %2264 = vmatprep.subr.bf16.mxu0 %v3124_v11  ;;  %v3202_v11 = vld [vmem:[%s3740_s22 + $0x694] ss:$8 sps:$4 sm:$0xff]  }
  0xe5   : > { %2101 = vmatpush1.bf16.msra.mxu1 %v3119_v12  ;;  %v3197_v12 = vld [vmem:[%s3740_s22 + $0x290] ss:$8 sps:$4 sm:$0xff]  }
  0xe6   : > { %2265 = vmatpush1.bf16.msra.mxu0 %v3122_v13  ;;  %2102 = vmatprep.subr.bf16.mxu1 %v3127_v16  ;;  %v3200_v13 = vld [vmem:[%s3740_s22 + $0x690] ss:$8 sps:$4 sm:$0xff]   ;;  %v3205_v16 = vld [vmem:[%s3740_s22 + $0x2a4] ss:$8 sps:$4 sm:$0xff]  }
  0xe7   : > { %2266 = vmatprep.subr.bf16.mxu0 %v3130_v17  ;;  %v3208_v17 = vld [vmem:[%s3740_s22 + $0x6a4] ss:$8 sps:$4 sm:$0xff]  }
  0xe9   : > { %2103 = vmatpush1.bf16.msra.mxu1 %v3125_v18  ;;  %v3203_v18 = vld [vmem:[%s3740_s22 + $0x2a0] ss:$8 sps:$4 sm:$0xff]  }
  0xea   : > { %2267 = vmatpush1.bf16.msra.mxu0 %v3128_v19  ;;  %2104 = vmatprep.subr.bf16.mxu1 %v3133_v20  ;;  %v3206_v19 = vld [vmem:[%s3740_s22 + $0x6a0] ss:$8 sps:$4 sm:$0xff]   ;;  %v3211_v20 = vld [vmem:[%s3740_s22 + $0x2b4] ss:$8 sps:$4 sm:$0xff]  }
  0xeb   : > { %2268 = vmatprep.subr.bf16.mxu0 %v3136_v21  ;;  %v3214_v21 = vld [vmem:[%s3740_s22 + $0x6b4] ss:$8 sps:$4 sm:$0xff]  }
  0xed   : > { %2105 = vmatpush1.bf16.msra.mxu1 %v3131_v22  ;;  %v3209_v22 = vld [vmem:[%s3740_s22 + $0x2b0] ss:$8 sps:$4 sm:$0xff]  }
  0xee   : > { %2269 = vmatpush1.bf16.msra.mxu0 %v3134_v23  ;;  %2106 = vmatprep.subr.bf16.mxu1 %v3139_v24  ;;  %v3212_v23 = vld [vmem:[%s3740_s22 + $0x6b0] ss:$8 sps:$4 sm:$0xff]   ;;  %v3217_v24 = vld [vmem:[%s3740_s22 + $0x2c4] ss:$8 sps:$4 sm:$0xff]  }
  0xef   : > { %2270 = vmatprep.subr.bf16.mxu0 %v3142_v25  ;;  %v3220_v25 = vld [vmem:[%s3740_s22 + $0x6c4] ss:$8 sps:$4 sm:$0xff]  }
  0xf1   : > { %2107 = vmatpush1.bf16.msra.mxu1 %v3137_v26  ;;  %v3215_v26 = vld [vmem:[%s3740_s22 + $0x2c0] ss:$8 sps:$4 sm:$0xff]  }
  0xf2   : > { %2271 = vmatpush1.bf16.msra.mxu0 %v3140_v27  ;;  %2117 = vmatprep.subr.bf16.mxu1 %v3145_v28  ;;  %v3218_v27 = vld [vmem:[%s3740_s22 + $0x6c0] ss:$8 sps:$4 sm:$0xff]   ;;  %v3223_v28 = vld [vmem:[%s3740_s22 + $0x2d4] ss:$8 sps:$4 sm:$0xff]  }
  0xf3   : > { %2281 = vmatprep.subr.bf16.mxu0 %v3148_v29  ;;  %v3226_v29 = vld [vmem:[%s3740_s22 + $0x6d4] ss:$8 sps:$4 sm:$0xff]  }
  0xf4   : > { %2109 = vmatmul.mubr.bf16.vlgmr.msra.gmra.mrb[0].mxu1 %v347_v31  ;;  %v3224_v31 = vld [vmem:[%s3740_s22 + $0x6d0] ss:$8 sps:$4 sm:$0xff]  }
  0xf5   : > { %2273 = vmatmul.mubr.bf16.vlgmr.msra.gmra.mrb[0].mxu0 %v355_v32  ;;  %2118 = vmatpush1.bf16.msra.mxu1 %v3143_v30  ;;  %v3221_v30 = vld [vmem:[%s3740_s22 + $0x2d0] ss:$8 sps:$4 sm:$0xff]   ;;  %v3229_v32 = vld [vmem:[%s3740_s22 + $0x2e4] ss:$8 sps:$4 sm:$0xff]  }
  0xf6   : > { %2282 = vmatpush1.bf16.msra.mxu0 %v3146_v33  ;;  %2119 = vmatprep.subr.bf16.mxu1 %v3151_v34  ;;  %v3232_v33 = vld [vmem:[%s3740_s22 + $0x6e4] ss:$8 sps:$4 sm:$0xff]   ;;  %v268_v34 = vcombine.high %v3906_v35, %v3906_v35  ;;  %v3233_v35 = vld [vmem:[%s3740_s22 + $0x2f0] ss:$8 sps:$4 sm:$0xff]  }
  0xf7   : > { %2283 = vmatprep.subr.bf16.mxu0 %v3154_v36  ;;  %2149 = vmatprep.mubr.bf16.mxu1 %v350_v44  ;;  %v302_v36 = vcombine.high %v3913_v14, %v3913_v14  ;;  %v3236_v14 = vld [vmem:[%s3740_s22 + $0x6f0] ss:$8 sps:$4 sm:$0xff]  }
  0xf8   : > { %2313 = vmatprep.mubr.bf16.mxu0 %v358_v48 }
  0xf9   : > { %2120 = vmatpush1.bf16.msra.mxu1 %v3149_v15  ;;  %v3227_v15 = vld [vmem:[%s3740_s22 + $0x2e0] ss:$8 sps:$4 sm:$0xff]   ;;  %v3987_v44 = vrot.slane %v302_v36, %v3793_v49  ;;  %v3313_v36 = vld [vmem:[%s3740_s22 + $0x3c4] ss:$8 sps:$4 sm:$0xff]  }
  0xfa   : > { %2284 = vmatpush1.bf16.msra.mxu0 %v3152_v38  ;;  %2121 = vmatprep.subr.bf16.mxu1 %v3157_v41  ;;  %v3230_v38 = vld [vmem:[%s3740_s22 + $0x6e0] ss:$8 sps:$4 sm:$0xff]   ;;  %v3238_v41 = vld [vmem:[%s3740_s22 + $0x6f4] ss:$8 sps:$4 sm:$0xff]  }
  0xfb   : > { %2285 = vmatprep.subr.bf16.mxu0 %v3160_v42  ;;  %v3984_v42 = vrot.slane %v268_v34, %v3793_v49  ;;  %v318_v48 = vcombine.high %v3987_v44, %v3987_v44  ;;  %v349_v49 = vpack.c.bf16 %v3911_v37, %v3911_v37  ;;  %v3245_v37 = vld [vmem:[%s3740_s22 + $0x310] ss:$8 sps:$4 sm:$0xff]  }
  0xfc   : > { %v3308_v34 = vld [vmem:[%s3740_s22 + $0x7b0] ss:$8 sps:$4 sm:$0xff]  }
  0xfd   : > { %2122 = vmatpush1.bf16.msra.mxu1 %v3155_v46  ;;  %v3244_v46 = vld [vmem:[%s3740_s22 + $0x704] ss:$8 sps:$4 sm:$0xff]  }
  0xfe   : > { %2286 = vmatpush1.bf16.msra.mxu0 %v3158_v47  ;;  %2123 = vmatprep.subr.bf16.mxu1 %v3163_v50  ;;  %v284_v47 = vcombine.high %v3984_v42, %v3984_v42  ;;  %v357_v50 = vpack.c.bf16 %v3921_v40, %v3921_v40  ;;  %v3248_v40 = vld [vmem:[%s3740_s22 + $0x710] ss:$8 sps:$4 sm:$0xff]  }
  0xff   : > { %2287 = vmatprep.subr.bf16.mxu0 %v3166_v51  ;;  %v3239_v51 = vld [vmem:[%s3740_s22 + $0x300] ss:$8 sps:$4 sm:$0xff]  }
 0x101   : > { %2124 = vmatpush1.bf16.msra.mxu1 %v3161_v52  ;;  %v3242_v52 = vld [vmem:[%s3740_s22 + $0x700] ss:$8 sps:$4 sm:$0xff]  }
 0x102   : > { %2288 = vmatpush1.bf16.msra.mxu0 %v3164_v53  ;;  %2125 = vmatprep.subr.bf16.mxu1 %v3169_v54  ;;  %v3247_v53 = vld [vmem:[%s3740_s22 + $0x314] ss:$8 sps:$4 sm:$0xff]  }
 0x103   : > { %2289 = vmatprep.subr.bf16.mxu0 %v3172_v55  ;;  %v3250_v54 = vld [vmem:[%s3740_s22 + $0x714] ss:$8 sps:$4 sm:$0xff]   ;;  %v352_v55 = vpack.c.bf16 %v284_v47, %v284_v47  ;;  %v3328_v47 = vld [vmem:[%s3740_s22 + $0x7e4] ss:$8 sps:$4 sm:$0xff]  }
 0x105   : > { %2126 = vmatpush1.bf16.msra.mxu1 %v3167_v56  ;;  %v360_v56 = vpack.c.bf16 %v318_v48, %v318_v48  ;;  %v3323_v48 = vld [vmem:[%s3740_s22 + $0x3e0] ss:$8 sps:$4 sm:$0xff]  }
 0x106   : > { %2290 = vmatpush1.bf16.msra.mxu0 %v3170_v57  ;;  %2127 = vmatprep.subr.bf16.mxu1 %v3175_v58  ;;  %v3253_v57 = vld [vmem:[%s3740_s22 + $0x324] ss:$8 sps:$4 sm:$0xff]  }
 0x107   : > { %2291 = vmatprep.subr.bf16.mxu0 %v3178_v59  ;;  %v3256_v58 = vld [vmem:[%s3740_s22 + $0x724] ss:$8 sps:$4 sm:$0xff]   ;;  %v3251_v59 = vld [vmem:[%s3740_s22 + $0x320] ss:$8 sps:$4 sm:$0xff]  }
 0x109   : > { %2128 = vmatpush1.bf16.msra.mxu1 %v3173_v60  ;;  %v3254_v60 = vld [vmem:[%s3740_s22 + $0x720] ss:$8 sps:$4 sm:$0xff]  }
 0x10a   : > { %2292 = vmatpush1.bf16.msra.mxu0 %v3176_v61  ;;  %2129 = vmatprep.subr.bf16.mxu1 %v3181_v62  ;;  %v3259_v61 = vld [vmem:[%s3740_s22 + $0x334] ss:$8 sps:$4 sm:$0xff]  }
 0x10b   : > { %2293 = vmatprep.subr.bf16.mxu0 %v3184_v63  ;;  %v3262_v62 = vld [vmem:[%s3740_s22 + $0x734] ss:$8 sps:$4 sm:$0xff]   ;;  %v3257_v63 = vld [vmem:[%s3740_s22 + $0x330] ss:$8 sps:$4 sm:$0xff]  }
 0x10d   : > { %2130 = vmatpush1.bf16.msra.mxu1 %v3179_v0  ;;  %v3260_v0 = vld [vmem:[%s3740_s22 + $0x730] ss:$8 sps:$4 sm:$0xff]  }
 0x10e   : > { %2294 = vmatpush1.bf16.msra.mxu0 %v3182_v1  ;;  %2131 = vmatprep.subr.bf16.mxu1 %v3187_v2  ;;  %v3265_v1 = vld [vmem:[%s3740_s22 + $0x344] ss:$8 sps:$4 sm:$0xff]  }
 0x10f   : > { %2295 = vmatprep.subr.bf16.mxu0 %v3190_v3  ;;  %v3268_v2 = vld [vmem:[%s3740_s22 + $0x744] ss:$8 sps:$4 sm:$0xff]   ;;  %v3263_v3 = vld [vmem:[%s3740_s22 + $0x340] ss:$8 sps:$4 sm:$0xff]  }
 0x111   : > { %2132 = vmatpush1.bf16.msra.mxu1 %v3185_v4  ;;  %v3266_v4 = vld [vmem:[%s3740_s22 + $0x740] ss:$8 sps:$4 sm:$0xff]  }
 0x112   : > { %2296 = vmatpush1.bf16.msra.mxu0 %v3188_v5  ;;  %2133 = vmatprep.subr.bf16.mxu1 %v3193_v6  ;;  %v3271_v5 = vld [vmem:[%s3740_s22 + $0x354] ss:$8 sps:$4 sm:$0xff]  }
 0x113   : > { %2297 = vmatprep.subr.bf16.mxu0 %v3196_v7  ;;  %v3274_v6 = vld [vmem:[%s3740_s22 + $0x754] ss:$8 sps:$4 sm:$0xff]   ;;  %v3269_v7 = vld [vmem:[%s3740_s22 + $0x350] ss:$8 sps:$4 sm:$0xff]  }
 0x115   : > { %2134 = vmatpush1.bf16.msra.mxu1 %v3191_v8  ;;  %v3272_v8 = vld [vmem:[%s3740_s22 + $0x750] ss:$8 sps:$4 sm:$0xff]  }
 0x116   : > { %2298 = vmatpush1.bf16.msra.mxu0 %v3194_v9  ;;  %2135 = vmatprep.subr.bf16.mxu1 %v3199_v10  ;;  %v3277_v9 = vld [vmem:[%s3740_s22 + $0x364] ss:$8 sps:$4 sm:$0xff]  }
 0x117   : > { %2299 = vmatprep.subr.bf16.mxu0 %v3202_v11  ;;  %v3280_v10 = vld [vmem:[%s3740_s22 + $0x764] ss:$8 sps:$4 sm:$0xff]   ;;  %v3275_v11 = vld [vmem:[%s3740_s22 + $0x360] ss:$8 sps:$4 sm:$0xff]  }
 0x119   : > { %2136 = vmatpush1.bf16.msra.mxu1 %v3197_v12  ;;  %v3278_v12 = vld [vmem:[%s3740_s22 + $0x760] ss:$8 sps:$4 sm:$0xff]  }
 0x11a   : > { %2300 = vmatpush1.bf16.msra.mxu0 %v3200_v13  ;;  %2137 = vmatprep.subr.bf16.mxu1 %v3205_v16  ;;  %v3283_v13 = vld [vmem:[%s3740_s22 + $0x374] ss:$8 sps:$4 sm:$0xff]  }
 0x11b   : > { %2301 = vmatprep.subr.bf16.mxu0 %v3208_v17  ;;  %v3286_v16 = vld [vmem:[%s3740_s22 + $0x774] ss:$8 sps:$4 sm:$0xff]   ;;  %v3281_v17 = vld [vmem:[%s3740_s22 + $0x370] ss:$8 sps:$4 sm:$0xff]  }
 0x11d   : > { %2138 = vmatpush1.bf16.msra.mxu1 %v3203_v18  ;;  %v3284_v18 = vld [vmem:[%s3740_s22 + $0x770] ss:$8 sps:$4 sm:$0xff]  }
 0x11e   : > { %2302 = vmatpush1.bf16.msra.mxu0 %v3206_v19  ;;  %2139 = vmatprep.subr.bf16.mxu1 %v3211_v20  ;;  %v3289_v19 = vld [vmem:[%s3740_s22 + $0x384] ss:$8 sps:$4 sm:$0xff]  }
 0x11f   : > { %2303 = vmatprep.subr.bf16.mxu0 %v3214_v21  ;;  %v3292_v20 = vld [vmem:[%s3740_s22 + $0x784] ss:$8 sps:$4 sm:$0xff]   ;;  %v3287_v21 = vld [vmem:[%s3740_s22 + $0x380] ss:$8 sps:$4 sm:$0xff]  }
 0x121   : > { %2140 = vmatpush1.bf16.msra.mxu1 %v3209_v22  ;;  %v3290_v22 = vld [vmem:[%s3740_s22 + $0x780] ss:$8 sps:$4 sm:$0xff]  }
 0x122   : > { %2304 = vmatpush1.bf16.msra.mxu0 %v3212_v23  ;;  %2141 = vmatprep.subr.bf16.mxu1 %v3217_v24  ;;  %v3295_v23 = vld [vmem:[%s3740_s22 + $0x394] ss:$8 sps:$4 sm:$0xff]  }
 0x123   : > { %2305 = vmatprep.subr.bf16.mxu0 %v3220_v25  ;;  %v3298_v24 = vld [vmem:[%s3740_s22 + $0x794] ss:$8 sps:$4 sm:$0xff]   ;;  %v3293_v25 = vld [vmem:[%s3740_s22 + $0x390] ss:$8 sps:$4 sm:$0xff]  }
 0x125   : > { %2142 = vmatpush1.bf16.msra.mxu1 %v3215_v26  ;;  %v3296_v26 = vld [vmem:[%s3740_s22 + $0x790] ss:$8 sps:$4 sm:$0xff]  }
 0x126   : > { %2306 = vmatpush1.bf16.msra.mxu0 %v3218_v27  ;;  %2143 = vmatprep.subr.bf16.mxu1 %v3223_v28  ;;  %v3301_v27 = vld [vmem:[%s3740_s22 + $0x3a4] ss:$8 sps:$4 sm:$0xff]  }
 0x127   : > { %2307 = vmatprep.subr.bf16.mxu0 %v3226_v29  ;;  %v3304_v28 = vld [vmem:[%s3740_s22 + $0x7a4] ss:$8 sps:$4 sm:$0xff]   ;;  %v3299_v29 = vld [vmem:[%s3740_s22 + $0x3a0] ss:$8 sps:$4 sm:$0xff]  }
 0x129   : > { %2144 = vmatpush1.bf16.msra.mxu1 %v3221_v30  ;;  %v3302_v30 = vld [vmem:[%s3740_s22 + $0x7a0] ss:$8 sps:$4 sm:$0xff]  }
 0x12a   : > { %2308 = vmatpush1.bf16.msra.mxu0 %v3224_v31  ;;  %2145 = vmatprep.subr.bf16.mxu1 %v3229_v32  ;;  %v3307_v31 = vld [vmem:[%s3740_s22 + $0x3b4] ss:$8 sps:$4 sm:$0xff]  }
 0x12b   : > { %2309 = vmatprep.subr.bf16.mxu0 %v3232_v33  ;;  %v3310_v32 = vld [vmem:[%s3740_s22 + $0x7b4] ss:$8 sps:$4 sm:$0xff]   ;;  %v3305_v33 = vld [vmem:[%s3740_s22 + $0x3b0] ss:$8 sps:$4 sm:$0xff]  }
 0x12d   : > { %2146 = vmatpush1.bf16.msra.mxu1 %v3227_v15  ;;  %v3316_v15 = vld [vmem:[%s3740_s22 + $0x7c4] ss:$8 sps:$4 sm:$0xff]  }
 0x12e   : > { %2310 = vmatpush1.bf16.msra.mxu0 %v3230_v38  ;;  %2147 = vmatprep.subr.bf16.mxu1 %v3235_v39  ;;  %v3311_v38 = vld [vmem:[%s3740_s22 + $0x3c0] ss:$8 sps:$4 sm:$0xff]  }
 0x12f   : > { %2311 = vmatprep.subr.bf16.mxu0 %v3238_v41  ;;  %v3314_v39 = vld [vmem:[%s3740_s22 + $0x7c0] ss:$8 sps:$4 sm:$0xff]   ;;  %v3319_v41 = vld [vmem:[%s3740_s22 + $0x3d4] ss:$8 sps:$4 sm:$0xff]  }
 0x131   : > { %2148 = vmatpush1.bf16.msra.mxu1 %v3233_v35  ;;  %v3322_v35 = vld [vmem:[%s3740_s22 + $0x7d4] ss:$8 sps:$4 sm:$0xff]  }
 0x132   : > { %2312 = vmatpush1.bf16.msra.mxu0 %v3236_v14  ;;  %2158 = vmatprep.subr.bf16.mxu1 %v3241_v45  ;;  %v3317_v14 = vld [vmem:[%s3740_s22 + $0x3d0] ss:$8 sps:$4 sm:$0xff]  }
 0x133   : > { %2322 = vmatprep.subr.bf16.mxu0 %v3244_v46  ;;  %v3320_v45 = vld [vmem:[%s3740_s22 + $0x7d0] ss:$8 sps:$4 sm:$0xff]   ;;  %v3325_v46 = vld [vmem:[%s3740_s22 + $0x3e4] ss:$8 sps:$4 sm:$0xff]  }
 0x134   : > { %2150 = vmatmul.mubr.bf16.vlgmr.msra.gmra.mrb[0].mxu1 %v349_v49  ;;  %v3326_v49 = vld [vmem:[%s3740_s22 + $0x7e0] ss:$8 sps:$4 sm:$0xff]  }
 0x135   : > { %2314 = vmatmul.mubr.bf16.vlgmr.msra.gmra.mrb[0].mxu0 %v357_v50  ;;  %2159 = vmatpush1.bf16.msra.mxu1 %v3239_v51  ;;  %v3331_v50 = vld [vmem:[%s3740_s22 + $0x3f4] ss:$8 sps:$4 sm:$0xff]  }
 0x136   : > { %2323 = vmatpush1.bf16.msra.mxu0 %v3242_v52  ;;  %2160 = vmatprep.subr.bf16.mxu1 %v3247_v53  ;;  %v3334_v51 = vld [vmem:[%s3740_s22 + $0x7f4] ss:$8 sps:$4 sm:$0xff]   ;;  %v3329_v53 = vld [vmem:[%s3740_s22 + $0x3f0] ss:$8 sps:$4 sm:$0xff]  }
 0x137   : > { %2324 = vmatprep.subr.bf16.mxu0 %v3250_v54  ;;  %2190 = vmatprep.mubr.bf16.mxu1 %v352_v55  ;;  %v2560_v52 = vld.sshfl [vmem:[#allocation2 + $0x20] sm:$0x33 pattern:$0x76325410]  ;;  %v3332_v54 = vld [vmem:[%s3740_s22 + $0x7f0] ss:$8 sps:$4 sm:$0xff]  }
 0x138   : > { %2354 = vmatprep.mubr.bf16.mxu0 %v360_v56  ;;  %v326_v55 = vcombine.high %v2560_v52, %v2560_v52  ;;  %v3339_v56 = vld [vmem:[%s3740_s22 + $0x804] ss:$8 sps:$4 sm:$0xff]  }
 0x139   : > { %2161 = vmatpush1.bf16.msra.mxu1 %v3245_v37  ;;  %v351_v37 = vpack.c.bf16 %v3984_v42, %v3984_v42  ;;  %v3340_v42 = vld [vmem:[%s3740_s22 + $0x810] ss:$8 sps:$4 sm:$0xff]  }
 0x13a   : > { %2325 = vmatpush1.bf16.msra.mxu0 %v3248_v40  ;;  %2162 = vmatprep.subr.bf16.mxu1 %v3253_v57  ;;  %v359_v40 = vpack.c.bf16 %v3987_v44, %v3987_v44  ;;  %v3337_v57 = vld [vmem:[%s3740_s22 + $0x800] ss:$8 sps:$4 sm:$0xff]   ;;  %v3345_v44 = vld [vmem:[%s3740_s22 + $0x824] ss:$8 sps:$4 sm:$0xff]  }
 0x13b   : > { %2326 = vmatprep.subr.bf16.mxu0 %v3256_v58  ;;  %v362_v58 = vpack.c.bf16 %v326_v55, %v326_v55 }
 0x13d   : > { %2163 = vmatpush1.bf16.msra.mxu1 %v3251_v59  ;;  %v3342_v59 = vld [vmem:[%s3740_s22 + $0x814] ss:$8 sps:$4 sm:$0xff]  }
 0x13e   : > { %2327 = vmatpush1.bf16.msra.mxu0 %v3254_v60  ;;  %2164 = vmatprep.subr.bf16.mxu1 %v3259_v61  ;;  %v3343_v60 = vld [vmem:[%s3740_s22 + $0x820] ss:$8 sps:$4 sm:$0xff]   ;;  %v3348_v61 = vld [vmem:[%s3740_s22 + $0x834] ss:$8 sps:$4 sm:$0xff]  }
 0x13f   : > { %2328 = vmatprep.subr.bf16.mxu0 %v3262_v62  ;;  %v3346_v62 = vld [vmem:[%s3740_s22 + $0x830] ss:$8 sps:$4 sm:$0xff]  }
 0x141   : > { %2165 = vmatpush1.bf16.msra.mxu1 %v3257_v63  ;;  %v3351_v63 = vld [vmem:[%s3740_s22 + $0x844] ss:$8 sps:$4 sm:$0xff]  }
 0x142   : > { %2329 = vmatpush1.bf16.msra.mxu0 %v3260_v0  ;;  %2166 = vmatprep.subr.bf16.mxu1 %v3265_v1  ;;  %v3349_v0 = vld [vmem:[%s3740_s22 + $0x840] ss:$8 sps:$4 sm:$0xff]   ;;  %v3354_v1 = vld [vmem:[%s3740_s22 + $0x854] ss:$8 sps:$4 sm:$0xff]  }
 0x143   : > { %2330 = vmatprep.subr.bf16.mxu0 %v3268_v2  ;;  %v3352_v2 = vld [vmem:[%s3740_s22 + $0x850] ss:$8 sps:$4 sm:$0xff]  }
 0x145   : > { %2167 = vmatpush1.bf16.msra.mxu1 %v3263_v3  ;;  %v3357_v3 = vld [vmem:[%s3740_s22 + $0x864] ss:$8 sps:$4 sm:$0xff]  }
 0x146   : > { %2331 = vmatpush1.bf16.msra.mxu0 %v3266_v4  ;;  %2168 = vmatprep.subr.bf16.mxu1 %v3271_v5  ;;  %v3355_v4 = vld [vmem:[%s3740_s22 + $0x860] ss:$8 sps:$4 sm:$0xff]   ;;  %v3360_v5 = vld [vmem:[%s3740_s22 + $0x874] ss:$8 sps:$4 sm:$0xff]  }
 0x147   : > { %2332 = vmatprep.subr.bf16.mxu0 %v3274_v6  ;;  %v3358_v6 = vld [vmem:[%s3740_s22 + $0x870] ss:$8 sps:$4 sm:$0xff]  }
 0x149   : > { %2169 = vmatpush1.bf16.msra.mxu1 %v3269_v7  ;;  %v3363_v7 = vld [vmem:[%s3740_s22 + $0x884] ss:$8 sps:$4 sm:$0xff]  }
 0x14a   : > { %2333 = vmatpush1.bf16.msra.mxu0 %v3272_v8  ;;  %2170 = vmatprep.subr.bf16.mxu1 %v3277_v9  ;;  %v3361_v8 = vld [vmem:[%s3740_s22 + $0x880] ss:$8 sps:$4 sm:$0xff]   ;;  %v3366_v9 = vld [vmem:[%s3740_s22 + $0x894] ss:$8 sps:$4 sm:$0xff]  }
 0x14b   : > { %2334 = vmatprep.subr.bf16.mxu0 %v3280_v10  ;;  %v3364_v10 = vld [vmem:[%s3740_s22 + $0x890] ss:$8 sps:$4 sm:$0xff]  }
 0x14d   : > { %2171 = vmatpush1.bf16.msra.mxu1 %v3275_v11  ;;  %v361_v11 = vpack.c.bf16 %v2560_v52, %v2560_v52 }
 0x14e   : > { %2335 = vmatpush1.bf16.msra.mxu0 %v3278_v12  ;;  %2172 = vmatprep.subr.bf16.mxu1 %v3283_v13 }
 0x14f   : > { %2336 = vmatprep.subr.bf16.mxu0 %v3286_v16 }
 0x151   : > { %2173 = vmatpush1.bf16.msra.mxu1 %v3281_v17 }
 0x152   : > { %2337 = vmatpush1.bf16.msra.mxu0 %v3284_v18  ;;  %2174 = vmatprep.subr.bf16.mxu1 %v3289_v19  ;;  %v643_v18 = vsub.s32 0, %v3785_v43  ;;  %v639_v19 = vld [vmem:[%s209_s28] sm:$0x3] }
 0x153   : > { %2338 = vmatprep.subr.bf16.mxu0 %v3292_v20  ;;  %v647_v20 = vsub.s32 1, %v3785_v43 }
 0x155   : > { %2175 = vmatpush1.bf16.msra.mxu1 %v3287_v21  ;;  %v644_v21 = vrot.slane %v639_v19, %v643_v18 }
 0x156   : > { %2339 = vmatpush1.bf16.msra.mxu0 %v3290_v22  ;;  %2176 = vmatprep.subr.bf16.mxu1 %v3295_v23  ;;  %v648_v22 = vrot.slane %v639_v19, %v647_v20 }
 0x157   : > { %2340 = vmatprep.subr.bf16.mxu0 %v3298_v24 }
 0x159   : > { %2177 = vmatpush1.bf16.msra.mxu1 %v3293_v25 }
 0x15a   : > { %2341 = vmatpush1.bf16.msra.mxu0 %v3296_v26  ;;  %2178 = vmatprep.subr.bf16.mxu1 %v3301_v27 }
 0x15b   : > { %2342 = vmatprep.subr.bf16.mxu0 %v3304_v28 }
 0x15d   : > { %2179 = vmatpush1.bf16.msra.mxu1 %v3299_v29 }
 0x15e   : > { %2343 = vmatpush1.bf16.msra.mxu0 %v3302_v30  ;;  %2180 = vmatprep.subr.bf16.mxu1 %v3307_v31 }
 0x15f   : > { %2344 = vmatprep.subr.bf16.mxu0 %v3310_v32 }
 0x161   : > { %2181 = vmatpush1.bf16.msra.mxu1 %v3305_v33 }
 0x162   : > { %2345 = vmatpush1.bf16.msra.mxu0 %v3308_v34  ;;  %2182 = vmatprep.subr.bf16.mxu1 %v3313_v36 }
 0x163   : > { %2346 = vmatprep.subr.bf16.mxu0 %v3316_v15 }
 0x165   : > { %2183 = vmatpush1.bf16.msra.mxu1 %v3311_v38 }
 0x166   : > { %2347 = vmatpush1.bf16.msra.mxu0 %v3314_v39  ;;  %2184 = vmatprep.subr.bf16.mxu1 %v3319_v41 }
 0x167   : > { %2348 = vmatprep.subr.bf16.mxu0 %v3322_v35 }
 0x169   : > { %2185 = vmatpush1.bf16.msra.mxu1 %v3317_v14 }
 0x16a   : > { %2349 = vmatpush1.bf16.msra.mxu0 %v3320_v45  ;;  %2186 = vmatprep.subr.bf16.mxu1 %v3325_v46 }
 0x16b   : > { %2350 = vmatprep.subr.bf16.mxu0 %v3328_v47 }
 0x16d   : > { %2187 = vmatpush1.bf16.msra.mxu1 %v3323_v48 }
 0x16e   : > { %2351 = vmatpush1.bf16.msra.mxu0 %v3326_v49  ;;  %2188 = vmatprep.subr.bf16.mxu1 %v3331_v50 }
 0x16f   : > { %2352 = vmatprep.subr.bf16.mxu0 %v3334_v51 }
 0x171   : > { %2189 = vmatpush1.bf16.msra.mxu1 %v3329_v53 }
 0x172   : > { %2353 = vmatpush1.bf16.msra.mxu0 %v3332_v54 }
 0x173   : > { %2363 = vmatprep.subr.bf16.mxu0 %v3339_v56 }
 0x174   : > { %2191 = vmatmul.mubr.bf16.vlgmr.msra.gmra.mrb[0].mxu1 %v351_v37 }
 0x175   : > { %2355 = vmatmul.mubr.bf16.vlgmr.msra.gmra.mrb[0].mxu0 %v359_v40 }
 0x176   : > { %2364 = vmatpush1.bf16.msra.mxu0 %v3337_v57  ;;  %2837 = vmatprep.mubr.msk.bf16.mxu0 %vm2031_vm0, %v362_v58 }
 0x177   : > { %2365 = vmatprep.subr.bf16.mxu0 %v3342_v59 }
 0x17a   : > { %2366 = vmatpush1.bf16.msra.mxu0 %v3340_v42 }
 0x17b   : > { %2367 = vmatprep.subr.bf16.mxu0 %v3345_v44 }
 0x17e   : > { %2368 = vmatpush1.bf16.msra.mxu0 %v3343_v60 }
 0x17f   : > { %2369 = vmatprep.subr.bf16.mxu0 %v3348_v61 }
 0x182   : > { %2370 = vmatpush1.bf16.msra.mxu0 %v3346_v62 }
 0x183   : > { %2371 = vmatprep.subr.bf16.mxu0 %v3351_v63 }
 0x186   : > { %2372 = vmatpush1.bf16.msra.mxu0 %v3349_v0 }
 0x187   : > { %2373 = vmatprep.subr.bf16.mxu0 %v3354_v1 }
 0x18a   : > { %2374 = vmatpush1.bf16.msra.mxu0 %v3352_v2 }
 0x18b   : > { %2375 = vmatprep.subr.bf16.mxu0 %v3357_v3 }
 0x18e   : > { %2376 = vmatpush1.bf16.msra.mxu0 %v3355_v4 }
 0x18f   : > { %2377 = vmatprep.subr.bf16.mxu0 %v3360_v5 }
 0x192   : > { %2378 = vmatpush1.bf16.msra.mxu0 %v3358_v6 }
 0x193   : > { %2379 = vmatprep.subr.bf16.mxu0 %v3363_v7 }
 0x196   : > { %2380 = vmatpush1.bf16.msra.mxu0 %v3361_v8 }
 0x197   : > { %2381 = vmatprep.subr.bf16.mxu0 %v3366_v9 }
 0x19a   : > { %2382 = vmatpush1.bf16.msra.mxu0 %v3364_v10 }
 0x19d   : > { %2396 = vmatmul.mubr.bf16.vlgmr.msra.gmra.mrb[0].mxu0 %v361_v11 }
 0x247   : > { %v2192_v12 = vpop.f32.mrb[0].mxu1 }
 0x248   : > { %v2194_v13 = vpop.f32.mrb[1].mxu1  ;;  %v2849_v23 = vadd.f32 %v2192_v12, %v644_v21 }
 0x249   : > { %v2196_v16 = vpop.f32.mrb[2].mxu1  ;;  %v2851_v24 = vadd.f32 %v2194_v13, %v648_v22 }
 0x24a   : > { %v2197_v17 = vpop.f32.mrb[3].mxu1 }
 0x270   : > { %v2397_v25 = vpop.f32.mrb[0].mxu0 }
 0x271   : > { %v2850_v26 = vadd.f32 %v2849_v23, %v2397_v25  ;;  %v2399_v27 = vpop.f32.mrb[1].mxu0 }
 0x272   : > { %v2852_v28 = vadd.f32 %v2851_v24, %v2399_v27  ;;  %v2401_v29 = vpop.f32.mrb[2].mxu0 }
 0x273   : > { %v2406_v30 = vmul.f32 1.442695, %v2850_v26  ;;  %v2402_v31 = vpop.f32.mrb[3].mxu0  ;;  %vm2404_vm1 = vcmp.gt.f32.partialorder %v2850_v26, 0.0 }
 0x274   : > { %v2408_v32 = vmul.f32 1.442695, %v2852_v28  ;;  %vm2405_vm2 = vcmp.gt.f32.partialorder %v2852_v28, 0.0 }
 0x275   : > { %3367 = vpow2.f32 %v2406_v30 }
 0x276   : > { %3369 = vpow2.f32 %v2408_v32 }
 0x27f   : > { %v3368_v33 = vpop.eup %3367 }
 0x280   : > { %v3370_v34 = vpop.eup %3369  ;;  %v2838_v43 = vadd.f32 -1.0, %v3368_v33 }
 0x281   : > { %v2839_v36 = vadd.f32 -1.0, %v3370_v34 }
 0x282   : > { %v2412_v15 = vmul.f32 1.6732632, %v2838_v43 }
 0x283   : > { %v2413_v38 = vmul.f32 1.6732632, %v2839_v36 }
 0x284   : > { %v2414_v39 = vsel %vm2404_vm1, %v2850_v26, %v2412_v15 }
 0x285   : > { %v2416_v41 = vmul.f32 1.050701, %v2414_v39  ;;  %v2415_v35 = vsel %vm2405_vm2, %v2852_v28, %v2413_v38 }
 0x286   : > { %v2417_v14 = vmul.f32 1.050701, %v2415_v35 }
 0x288   : > { %v2420_v45 = vcombine.low %v2416_v41, %v2417_v14 }
 0x28a   : > { %2840 = vst.sshfl [vmem:[%s236_s20] sm:$0x33 pattern:$0x76325410] %v2420_v45 }
 0x28b   : > { %3472 = shalt.err (!%p3469_p1)
}
 0x28c   : > { %s3473_s17 = scalar_lea.hbm %s4095_s5, 64  ;;  %s3477_s21 = scalar_lea.hbm %s4142_s3, 128 }
 0x28d   : > { %p3474_p6 = scmp.ne.s32.totalorder %s4095_s5, %s3473_s17  ;;  %p3478_p7 = scmp.lt.u32.totalorder %s4095_s5, %s4142_s3 }
 0x28e   : > { %p3479_p9 = scmp.lt.u32.totalorder %s3477_s21, %s3473_s17  ;;  %p3481_p12 = scmp.lt.u32.totalorder %s3473_s17, %s4095_s5 }
 0x28f   : > { %p3475_p5 = pnand %p3474_p6, %p4163_p4 }
 0x290   : > { %p3480_p10 = por %p3479_p9, %p3478_p7 }
 0x291   : > { %p3476_p2 = pneg %p3475_p5 }
 0x292   : > { %p3482_p0 = por %p3481_p12, %p3480_p10 }
 0x294   : > { %p3483_p11 = pnand %p3482_p0, %p3476_p2 }
 0x296   : > { %3486 = shalt.err (!%p3483_p11)
}
 0x297   : > { %2891 = dma.vmem_to_hbm [thread:$0]  (%p4163_p4), %s4097_s23, 64, %s4095_s5, %s2431_s6  }
 0x298 PF: > { %s2457_s28 = sand.u32 1, %s3517_s12   ;;  %p4164_p13 = scmp.ne.s32.totalorder %s4153_s29, 0 }
 0x299   : > { %p4165_p3 = scmp.ge.s32.totalorder %s3529_s15, 2  ;;  %s2458_s4 = scalar_lea.sflag [#allocation4], %s2457_s28 }
 0x29b   : > { %p2905_p8 = pnand %p4165_p3, %p4164_p13 }
 0x29d   : > { %3512 = dma.done.wait (!%p2905_p8), %s2458_s4, 64  }
 0x29e   : > { %3514 = vsyncadd (!%p2905_p8), %s2458_s4, 4294967232  ;;  %p17_p1 = scmp.ge.s32.totalorder %s3580_s16, 4   ;;  %s4166_s12 = smov %s3521_s13 }
 0x29f   : > { %s4167_s13 = smov %s3525_s14  ;;  %s4168_s14 = smov %s3591_s19 }
 0x2a0   : > { %s4169_s15 = smov %s3580_s16  ;;  %19 = sbr.rel (!%p17_p1) target bundleno = 6 (0x6), region = 93 }
 0x2a7   :  { %2463 = vsyncpa [#allocation3], 1 }
 0x2a8   :  { %2465 = vsyncpa [#allocation3 + $0x1], 1 }
 0x2a9   :  { %2466 = vsyncpa [#allocation6], 1 }
 0x2aa   :  { %2468 = vsyncpa [#allocation6 + $0x1], 1 }
 0x2ab   :  { %2469 = vsyncpa [#allocation4], 1 }
 0x2ac   :  { %2471 = vsyncpa [#allocation4 + $0x1], 1 }

</bundles_post_ra>
